<compile_context>
chip_gen: v5e
topology: v5e:2x2
jax: 0.10.0
libtpu: 0.0.40
codegen_flags: <defaults>
</compile_context>

<pallas_src>
import functools

import jax
import jax.numpy as jnp
from jax import lax
from jax.experimental import pallas as pl
from jax.experimental.pallas import tpu as pltpu

EXPANSION = 4
BN_EPS = 1e-5
LANE = 128
SUB = 8
VMEM_LIMIT = 64 * 1024 * 1024


# ------------------------------ small helpers ------------------------------
def _round_up(x, m):
    return ((x + m - 1) // m) * m


def _row_tile(M, target=512):
    """Row tile: multiple of 8, <= target, with >=2 grid steps when possible."""
    if M >= 2 * target:
        return target
    half = _round_up(pl.cdiv(M, 2), SUB)
    return max(SUB, min(half, _round_up(M, SUB)))


def _pad_rows(a, rows):
    return a if a.shape[0] == rows else jnp.pad(a, ((0, rows - a.shape[0]), (0, 0)))


def _pad_to(a, shape):
    return jnp.pad(a, [(0, t - s) for s, t in zip(a.shape, shape)])


def _cparams(n_parallel):
    return pltpu.CompilerParams(
        dimension_semantics=("parallel",) * n_parallel,
        vmem_limit_bytes=VMEM_LIMIT)


# ----------------------------- Pallas kernels ------------------------------
def _matmul_bias_kernel(x_ref, w_ref, b_ref, o_ref, *, relu):
    acc = jnp.dot(x_ref[...], w_ref[...], preferred_element_type=jnp.float32)
    y = acc + b_ref[...]
    if relu:
        y = jnp.maximum(y, 0.0)
    o_ref[...] = y.astype(o_ref.dtype)


def _conv3x3_kernel(ph_ref, w_ref, b_ref, o_ref, *, stride, Ho, Wo):
    """3x3 conv as 9 shifted-window matmuls accumulated in f32, + bias + ReLU."""
    C = o_ref.shape[-1]
    acc = None
    for ky in range(3):
        for kx in range(3):
            phase = (ky % stride) * stride + (kx % stride)
            oy, ox = ky // stride, kx // stride
            win = ph_ref[phase, 0, oy:oy + Ho, ox:ox + Wo, :]       # (Ho, Wo, C)
            part = jnp.dot(win.reshape(Ho * Wo, C), w_ref[ky * 3 + kx],
                           preferred_element_type=jnp.float32)
            acc = part if acc is None else acc + part
    y = jnp.maximum(acc + b_ref[...], 0.0)
    o_ref[0] = y.astype(o_ref.dtype)


def _final_proj_kernel(h_ref, w3_ref, b3_ref, x_ref, ws_ref, bs_ref, o_ref):
    """relu((h @ w3) + b3 + (x @ ws) + bs) — conv3+BN fused with projection shortcut."""
    acc = jnp.dot(h_ref[...], w3_ref[...], preferred_element_type=jnp.float32)
    acc = acc + jnp.dot(x_ref[...], ws_ref[...], preferred_element_type=jnp.float32)
    y = acc + b3_ref[...] + bs_ref[...]
    o_ref[...] = jnp.maximum(y, 0.0).astype(o_ref.dtype)


def _final_id_kernel(h_ref, w3_ref, b3_ref, r_ref, o_ref):
    """relu((h @ w3) + b3 + residual) — conv3+BN fused with identity shortcut."""
    acc = jnp.dot(h_ref[...], w3_ref[...], preferred_element_type=jnp.float32)
    y = acc + b3_ref[...] + r_ref[...].astype(jnp.float32)
    o_ref[...] = jnp.maximum(y, 0.0).astype(o_ref.dtype)


# ----------------------------- pallas_call hosts ----------------------------
def matmul_bias_act(x2d, w, b, *, relu, out_dtype):
    M, K = x2d.shape
    C = w.shape[1]
    tm = _row_tile(M)
    Mp = _round_up(M, tm)
    out = pl.pallas_call(
        functools.partial(_matmul_bias_kernel, relu=relu),
        out_shape=jax.ShapeDtypeStruct((Mp, C), out_dtype),
        grid=(Mp // tm,),
        in_specs=[
            pl.BlockSpec((tm, K), lambda i: (i, 0)),
            pl.BlockSpec((K, C), lambda i: (0, 0)),
            pl.BlockSpec((1, C), lambda i: (0, 0)),
        ],
        out_specs=pl.BlockSpec((tm, C), lambda i: (i, 0)),
        compiler_params=_cparams(1),
    )(_pad_rows(x2d, Mp), w, b)
    return out[:M]


def conv3x3_bn_relu(phases, w2, b2, *, stride, Ho, Wo):
    s2, N, PH, PW, C = phases.shape
    return pl.pallas_call(
        functools.partial(_conv3x3_kernel, stride=stride, Ho=Ho, Wo=Wo),
        out_shape=jax.ShapeDtypeStruct((N, Ho * Wo, C), jnp.bfloat16),
        grid=(N,),
        in_specs=[
            pl.BlockSpec((s2, 1, PH, PW, C), lambda n: (0, n, 0, 0, 0)),
            pl.BlockSpec((9, C, C), lambda n: (0, 0, 0)),
            pl.BlockSpec((1, C), lambda n: (0, 0)),
        ],
        out_specs=pl.BlockSpec((1, Ho * Wo, C), lambda n: (n, 0, 0)),
        compiler_params=_cparams(1),
    )(phases, w2, b2)


def conv1x1_add_relu(h2d, w3, b3, res2d, ws=None, bs=None):
    M, K = h2d.shape
    C = w3.shape[1]
    tm = _row_tile(M)
    Mp = _round_up(M, tm)
    hp = _pad_rows(h2d, Mp)
    rp = _pad_rows(res2d, Mp)
    row = lambda i: (i, 0)
    const = lambda i: (0, 0)
    if ws is None:
        kernel = _final_id_kernel
        args = (hp, w3, b3, rp)
        in_specs = [pl.BlockSpec((tm, K), row),
                    pl.BlockSpec((K, C), const),
                    pl.BlockSpec((1, C), const),
                    pl.BlockSpec((tm, C), row)]
    else:
        Ks = res2d.shape[1]
        kernel = _final_proj_kernel
        args = (hp, w3, b3, rp, ws, bs)
        in_specs = [pl.BlockSpec((tm, K), row),
                    pl.BlockSpec((K, C), const),
                    pl.BlockSpec((1, C), const),
                    pl.BlockSpec((tm, Ks), row),
                    pl.BlockSpec((Ks, C), const),
                    pl.BlockSpec((1, C), const)]
    out = pl.pallas_call(
        kernel,
        out_shape=jax.ShapeDtypeStruct((Mp, C), jnp.float32),
        grid=(Mp // tm,),
        in_specs=in_specs,
        out_specs=pl.BlockSpec((tm, C), row),
        compiler_params=_cparams(1),
    )(*args)
    return out[:M]


# ------------------------------- glue (JAX) --------------------------------
def fold_bn(gamma, beta, mean, var):
    scale = gamma / jnp.sqrt(var + BN_EPS)
    return scale, beta - mean * scale


def _fold_1x1(w_oihw, scale, cin_p, cout_p):
    cout, cin = w_oihw.shape[:2]
    w = w_oihw.reshape(cout, cin).T * scale[None, :]          # BN scale folded in
    return _pad_to(w, (cin_p, cout_p)).astype(jnp.bfloat16)


def _fold_3x3(w_oihw, scale, c_p):
    cout, cin = w_oihw.shape[:2]
    w = jnp.transpose(w_oihw, (2, 3, 1, 0)) * scale.reshape(1, 1, 1, -1)
    w = w.reshape(9, cin, cout)                               # tap index ky*3+kx
    return _pad_to(w, (9, c_p, c_p)).astype(jnp.bfloat16)


def _bias_row(bias, c_p):
    return _pad_to(bias[None, :], (1, c_p)).astype(jnp.float32)


def _split_phases(h1, stride, PH, PW):
    """Pad spatial dims by 1 and split into stride x stride phases -> (s^2,N,PH,PW,C)."""
    N, H, W, C = h1.shape
    hp = jnp.pad(h1, ((0, 0), (1, 1), (1, 1), (0, 0)))
    parts = []
    for r in range(stride):
        for c in range(stride):
            ph = hp[:, r::stride, c::stride, :][:, :PH, :PW, :]
            parts.append(_pad_to(ph, (N, PH, PW, C)))
    return jnp.stack(parts, axis=0)


@functools.partial(jax.jit, static_argnames=("stride",))
def bottleneck_pallas(x_nchw, p, *, stride):
    x = jnp.transpose(x_nchw, (0, 2, 3, 1))                   # NHWC
    N, H, W, Cin = x.shape
    mid = p["w1"].shape[0]
    out_c = mid * EXPANSION
    cin_p, mid_p, out_p = (_round_up(c, LANE) for c in (Cin, mid, out_c))

    xb = _pad_to(x, (N, H, W, cin_p)).astype(jnp.bfloat16)

    # conv1 (1x1) -> BN -> ReLU
    s1, b1 = fold_bn(*p["bn1"])
    h1 = matmul_bias_act(xb.reshape(N * H * W, cin_p),
                         _fold_1x1(p["w1"], s1, cin_p, mid_p),
                         _bias_row(b1, mid_p), relu=True, out_dtype=jnp.bfloat16)
    h1 = h1.reshape(N, H, W, mid_p)

    # conv2 (3x3, pad 1, stride) -> BN -> ReLU  (9 tap matmuls in one kernel)
    Ho = (H - 1) // stride + 1
    Wo = (W - 1) // stride + 1
    Wp = _round_up(Wo, SUB)           # sublane-aligned width => layout-preserving reshape
    off = 2 // stride                 # max in-phase tap offset (2 for s=1, 1 for s=2)
    PH, PW = Ho + off, Wp + off
    s2, b2 = fold_bn(*p["bn2"])
    phases = _split_phases(h1, stride, PH, PW)
    h2 = conv3x3_bn_relu(phases, _fold_3x3(p["w2"], s2, mid_p),
                         _bias_row(b2, mid_p), stride=stride, Ho=Ho, Wo=Wp)
    h2 = h2.reshape(N * Ho * Wp, mid_p)

    # shortcut rows (same width padding as the residual branch)
    res = xb[:, ::stride, ::stride, :]                         # (N, Ho, Wo, cin_p)
    res = _pad_to(res, (N, Ho, Wp, cin_p)).reshape(N * Ho * Wp, cin_p)

    # conv3 (1x1) -> BN, fused with shortcut branch + residual add + final ReLU
    s3, b3 = fold_bn(*p["bn3"])
    w3 = _fold_1x1(p["w3"], s3, mid_p, out_p)
    b3r = _bias_row(b3, out_p)
    if "ws" in p:
        ss, bs = fold_bn(*p["bns"])
        out2d = conv1x1_add_relu(h2, w3, b3r, res,
                                 _fold_1x1(p["ws"], ss, cin_p, out_p),
                                 _bias_row(bs, out_p))
    else:
        out2d = conv1x1_add_relu(h2, w3, b3r, res)

    out = out2d.reshape(N, Ho, Wp, out_p)[:, :, :Wo, :out_c]
    return jnp.transpose(out, (0, 3, 1, 2))                   # back to NCHW


# -------------------------------- params ------------------------------------
def init_params(key, in_channels, mid, stride):
    out_c = mid * EXPANSION
    ks = jax.random.split(key, 8)

    def conv_w(k, shape):                                      # OIHW, kaiming-ish
        fan_in = shape[1] * shape[2] * shape[3]
        return jax.random.normal(k, shape, jnp.float32) * (2.0 / fan_in) ** 0.5

    def bn_p(k, c):
        k1, k2, k3, k4 = jax.random.split(k, 4)
        return (jax.random.uniform(k1, (c,), jnp.float32, 0.5, 1.5),
                jax.random.normal(k2, (c,), jnp.float32) * 0.1,
                jax.random.normal(k3, (c,), jnp.float32) * 0.1,
                jax.random.uniform(k4, (c,), jnp.float32, 0.5, 1.5))

    p = {"w1": conv_w(ks[0], (mid, in_channels, 1, 1)), "bn1": bn_p(ks[1], mid),
         "w2": conv_w(ks[2], (mid, mid, 3, 3)),         "bn2": bn_p(ks[3], mid),
         "w3": conv_w(ks[4], (out_c, mid, 1, 1)),       "bn3": bn_p(ks[5], out_c)}
    if stride != 1 or in_channels != out_c:
        p["ws"] = conv_w(ks[6], (out_c, in_channels, 1, 1))
        p["bns"] = bn_p(ks[7], out_c)
    return p


# ---------------------------- pure-JAX reference ----------------------------
def bottleneck_ref(x_nchw, p, stride):
    def conv(x, w, s=1, padding="VALID"):
        return lax.conv_general_dilated(
            x, w, (s, s), padding,
            dimension_numbers=("NCHW", "OIHW", "NCHW"),
            precision=lax.Precision.HIGHEST)

    def bn(x, prm):
        g, b, m, v = (a.reshape(1, -1, 1, 1) for a in prm)
        return (x - m) / jnp.sqrt(v + BN_EPS) * g + b

    h = jax.nn.relu(bn(conv(x_nchw, p["w1"]), p["bn1"]))
    h = jax.nn.relu(bn(conv(h, p["w2"], stride, ((1, 1), (1, 1))), p["bn2"]))
    h = bn(conv(h, p["w3"]), p["bn3"])
    sc = bn(conv(x_nchw, p["ws"], stride), p["bns"]) if "ws" in p else x_nchw
    return jax.nn.relu(h + sc)


# --------------------------------- test -------------------------------------
def _run_case(key, N, Cin, H, W, mid, stride):
    kx, kp = jax.random.split(key)
    x = jax.random.normal(kx, (N, Cin, H, W), jnp.float32)
    p = init_params(kp, Cin, mid, stride)

    out = jax.block_until_ready(bottleneck_pallas(x, p, stride=stride))
    ref = bottleneck_ref(x, p, stride)

    Ho = (H - 1) // stride + 1
    Wo = (W - 1) // stride + 1
    assert out.shape == (N, mid * EXPANSION, Ho, Wo), out.shape
    # bf16 activations/weights with f32 accumulation: compare against the
    # overall output magnitude (robust to cancellation near zero crossings).
    max_err = float(jnp.max(jnp.abs(out - ref)))
    scale = max(1.0, float(jnp.max(jnp.abs(ref))))
    assert max_err <= 3e-2 * scale, f"max abs err {max_err} (scale {scale})"


if __name__ == "__main__":
    key = jax.random.PRNGKey(0)
    k1, k2 = jax.random.split(key)
    # downsampling block with projection shortcut (stride 2)
    _run_case(k1, N=2, Cin=4, H=16, W=16, mid=4, stride=2)
    # identity-shortcut block (stride 1, in_channels == mid * expansion)
    _run_case(k2, N=2, Cin=16, H=16, W=16, mid=4, stride=1)
    print("KERNEL_OK")
</pallas_src>

<mosaic_0001>
module attributes {stable_mosaic.version = 11 : i64} {
  func.func @_matmul_bias_kernel(%arg0: i32, %arg1: memref<256x128xbf16, #tpu.memory_space<vmem>>, %arg2: memref<128x128xbf16, #tpu.memory_space<vmem>>, %arg3: memref<1x128xf32, #tpu.memory_space<vmem>>, %arg4: memref<256x128xbf16, #tpu.memory_space<vmem>>) attributes {dimension_semantics = [#tpu.dimension_semantics<parallel>], iteration_bounds = array<i64: 2>, scalar_prefetch = 0 : i64, scratch_operands = 0 : i64, tpu.core_type = #tpu.core_type<tc>, window_params = [{transform_indices = @transform_0, window_bounds = array<i64: 256, 128>}, {pipeline_mode = #tpu.pipeline_mode<synchronous>, transform_indices = @transform_1, window_bounds = array<i64: 128, 128>}, {pipeline_mode = #tpu.pipeline_mode<synchronous>, transform_indices = @transform_2, window_bounds = array<i64: 1, 128>}, {transform_indices = @transform_3, window_bounds = array<i64: 256, 128>}]} {
    %c0 = arith.constant 0 : index
    %c0_0 = arith.constant 0 : index
    %0 = vector.load %arg1[%c0, %c0_0] : memref<256x128xbf16, #tpu.memory_space<vmem>>, vector<256x128xbf16>
    %c0_1 = arith.constant 0 : index
    %c0_2 = arith.constant 0 : index
    %1 = vector.load %arg2[%c0_1, %c0_2] : memref<128x128xbf16, #tpu.memory_space<vmem>>, vector<128x128xbf16>
    %cst = arith.constant dense<0.000000e+00> : vector<256x128xf32>
    %2 = tpu.matmul %0, %1, %cst {dimension_numbers = #tpu.dot_dimension_numbers<[1], [0], [0], [1], [0, 0, 1, 1], [], []>} : vector<256x128xbf16>, vector<128x128xbf16>, vector<256x128xf32> -> vector<256x128xf32>
    %c0_3 = arith.constant 0 : index
    %c0_4 = arith.constant 0 : index
    %3 = vector.load %arg3[%c0_3, %c0_4] : memref<1x128xf32, #tpu.memory_space<vmem>>, vector<1x128xf32>
    %4 = vector.broadcast %3 : vector<1x128xf32> to vector<256x128xf32>
    %5 = arith.addf %2, %4 : vector<256x128xf32>
    %cst_5 = arith.constant 0.000000e+00 : f32
    %6 = vector.broadcast %cst_5 : f32 to vector<256x128xf32>
    %7 = arith.maximumf %5, %6 : vector<256x128xf32>
    %8 = arith.truncf %7 : vector<256x128xf32> to vector<256x128xbf16>
    %c0_6 = arith.constant 0 : index
    %c0_7 = arith.constant 0 : index
    %9 = vector.load %arg4[%c0_6, %c0_7] : memref<256x128xbf16, #tpu.memory_space<vmem>>, vector<256x128xbf16>
    tpu.vector_store %arg4[%c0_6, %c0_7], %8 {strides = array<i32>} : memref<256x128xbf16, #tpu.memory_space<vmem>>, vector<256x128xbf16>,
    return
  }
  func.func @transform_0(%arg0: i32) -> (i32, i32) {
    %c0_i32 = arith.constant 0 : i32
    %c0_i32_0 = arith.constant 0 : i32
    return %arg0, %c0_i32 : i32, i32
  }
  func.func @transform_1(%arg0: i32) -> (i32, i32) {
    %c0_i32 = arith.constant 0 : i32
    %c0_i32_0 = arith.constant 0 : i32
    %c0_i32_1 = arith.constant 0 : i32
    return %c0_i32, %c0_i32_0 : i32, i32
  }
  func.func @transform_2(%arg0: i32) -> (i32, i32) {
    %c0_i32 = arith.constant 0 : i32
    %c0_i32_0 = arith.constant 0 : i32
    %c0_i32_1 = arith.constant 0 : i32
    return %c0_i32, %c0_i32_0 : i32, i32
  }
  func.func @transform_3(%arg0: i32) -> (i32, i32) {
    %c0_i32 = arith.constant 0 : i32
    %c0_i32_0 = arith.constant 0 : i32
    return %arg0, %c0_i32 : i32, i32
  }
}

module attributes {stable_mosaic.version = 11 : i64} {
  func.func @_conv3x3_kernel(%arg0: i32, %arg1: memref<4x1x9x9x128xbf16, #tpu.memory_space<vmem>>, %arg2: memref<9x128x128xbf16, #tpu.memory_space<vmem>>, %arg3: memref<1x128xf32, #tpu.memory_space<vmem>>, %arg4: memref<1x64x128xbf16, #tpu.memory_space<vmem>>) attributes {dimension_semantics = [#tpu.dimension_semantics<parallel>], iteration_bounds = array<i64: 2>, scalar_prefetch = 0 : i64, scratch_operands = 0 : i64, tpu.core_type = #tpu.core_type<tc>, window_params = [{transform_indices = @transform_0, window_bounds = array<i64: 4, 1, 9, 9, 128>}, {pipeline_mode = #tpu.pipeline_mode<synchronous>, transform_indices = @transform_1, window_bounds = array<i64: 9, 128, 128>}, {pipeline_mode = #tpu.pipeline_mode<synchronous>, transform_indices = @transform_2, window_bounds = array<i64: 1, 128>}, {transform_indices = @transform_3, window_bounds = array<i64: 1, 64, 128>}]} {
    %c0 = arith.constant 0 : index
    %c0_0 = arith.constant 0 : index
    %c0_1 = arith.constant 0 : index
    %c0_2 = arith.constant 0 : index
    %c0_3 = arith.constant 0 : index
    %0 = vector.load %arg1[%c0, %c0_0, %c0_1, %c0_2, %c0_3] : memref<4x1x9x9x128xbf16, #tpu.memory_space<vmem>>, vector<1x1x8x8x128xbf16>
    %1 = vector.shape_cast %0 : vector<1x1x8x8x128xbf16> to vector<8x8x128xbf16>
    %2 = vector.shape_cast %1 : vector<8x8x128xbf16> to vector<64x128xbf16>
    %c0_4 = arith.constant 0 : index
    %c0_5 = arith.constant 0 : index
    %c0_6 = arith.constant 0 : index
    %3 = vector.load %arg2[%c0_4, %c0_5, %c0_6] : memref<9x128x128xbf16, #tpu.memory_space<vmem>>, vector<1x128x128xbf16>
    %4 = vector.shape_cast %3 : vector<1x128x128xbf16> to vector<128x128xbf16>
    %cst = arith.constant dense<0.000000e+00> : vector<64x128xf32>
    %5 = tpu.matmul %2, %4, %cst {dimension_numbers = #tpu.dot_dimension_numbers<[1], [0], [0], [1], [0, 0, 1, 1], [], []>} : vector<64x128xbf16>, vector<128x128xbf16>, vector<64x128xf32> -> vector<64x128xf32>
    %c1 = arith.constant 1 : index
    %c0_7 = arith.constant 0 : index
    %c0_8 = arith.constant 0 : index
    %c0_9 = arith.constant 0 : index
    %c0_10 = arith.constant 0 : index
    %6 = vector.load %arg1[%c1, %c0_7, %c0_8, %c0_9, %c0_10] : memref<4x1x9x9x128xbf16, #tpu.memory_space<vmem>>, vector<1x1x8x8x128xbf16>
    %7 = vector.shape_cast %6 : vector<1x1x8x8x128xbf16> to vector<8x8x128xbf16>
    %8 = vector.shape_cast %7 : vector<8x8x128xbf16> to vector<64x128xbf16>
    %c1_11 = arith.constant 1 : index
    %c0_12 = arith.constant 0 : index
    %c0_13 = arith.constant 0 : index
    %9 = vector.load %arg2[%c1_11, %c0_12, %c0_13] : memref<9x128x128xbf16, #tpu.memory_space<vmem>>, vector<1x128x128xbf16>
    %10 = vector.shape_cast %9 : vector<1x128x128xbf16> to vector<128x128xbf16>
    %cst_14 = arith.constant dense<0.000000e+00> : vector<64x128xf32>
    %11 = tpu.matmul %8, %10, %cst_14 {dimension_numbers = #tpu.dot_dimension_numbers<[1], [0], [0], [1], [0, 0, 1, 1], [], []>} : vector<64x128xbf16>, vector<128x128xbf16>, vector<64x128xf32> -> vector<64x128xf32>
    %12 = arith.addf %5, %11 : vector<64x128xf32>
    %c0_15 = arith.constant 0 : index
    %c0_16 = arith.constant 0 : index
    %c0_17 = arith.constant 0 : index
    %c1_18 = arith.constant 1 : index
    %c0_19 = arith.constant 0 : index
    %13 = vector.load %arg1[%c0_15, %c0_16, %c0_17, %c1_18, %c0_19] : memref<4x1x9x9x128xbf16, #tpu.memory_space<vmem>>, vector<1x1x8x8x128xbf16>
    %14 = vector.shape_cast %13 : vector<1x1x8x8x128xbf16> to vector<8x8x128xbf16>
    %15 = vector.shape_cast %14 : vector<8x8x128xbf16> to vector<64x128xbf16>
    %c2 = arith.constant 2 : index
    %c0_20 = arith.constant 0 : index
    %c0_21 = arith.constant 0 : index
    %16 = vector.load %arg2[%c2, %c0_20, %c0_21] : memref<9x128x128xbf16, #tpu.memory_space<vmem>>, vector<1x128x128xbf16>
    %17 = vector.shape_cast %16 : vector<1x128x128xbf16> to vector<128x128xbf16>
    %cst_22 = arith.constant dense<0.000000e+00> : vector<64x128xf32>
    %18 = tpu.matmul %15, %17, %cst_22 {dimension_numbers = #tpu.dot_dimension_numbers<[1], [0], [0], [1], [0, 0, 1, 1], [], []>} : vector<64x128xbf16>, vector<128x128xbf16>, vector<64x128xf32> -> vector<64x128xf32>
    %19 = arith.addf %12, %18 : vector<64x128xf32>
    %c2_23 = arith.constant 2 : index
    %c0_24 = arith.constant 0 : index
    %c0_25 = arith.constant 0 : index
    %c0_26 = arith.constant 0 : index
    %c0_27 = arith.constant 0 : index
    %20 = vector.load %arg1[%c2_23, %c0_24, %c0_25, %c0_26, %c0_27] : memref<4x1x9x9x128xbf16, #tpu.memory_space<vmem>>, vector<1x1x8x8x128xbf16>
    %21 = vector.shape_cast %20 : vector<1x1x8x8x128xbf16> to vector<8x8x128xbf16>
    %22 = vector.shape_cast %21 : vector<8x8x128xbf16> to vector<64x128xbf16>
    %c3 = arith.constant 3 : index
    %c0_28 = arith.constant 0 : index
    %c0_29 = arith.constant 0 : index
    %23 = vector.load %arg2[%c3, %c0_28, %c0_29] : memref<9x128x128xbf16, #tpu.memory_space<vmem>>, vector<1x128x128xbf16>
    %24 = vector.shape_cast %23 : vector<1x128x128xbf16> to vector<128x128xbf16>
    %cst_30 = arith.constant dense<0.000000e+00> : vector<64x128xf32>
    %25 = tpu.matmul %22, %24, %cst_30 {dimension_numbers = #tpu.dot_dimension_numbers<[1], [0], [0], [1], [0, 0, 1, 1], [], []>} : vector<64x128xbf16>, vector<128x128xbf16>, vector<64x128xf32> -> vector<64x128xf32>
    %26 = arith.addf %19, %25 : vector<64x128xf32>
    %c3_31 = arith.constant 3 : index
    %c0_32 = arith.constant 0 : index
    %c0_33 = arith.constant 0 : index
    %c0_34 = arith.constant 0 : index
    %c0_35 = arith.constant 0 : index
    %27 = vector.load %arg1[%c3_31, %c0_32, %c0_33, %c0_34, %c0_35] : memref<4x1x9x9x128xbf16, #tpu.memory_space<vmem>>, vector<1x1x8x8x128xbf16>
    %28 = vector.shape_cast %27 : vector<1x1x8x8x128xbf16> to vector<8x8x128xbf16>
    %29 = vector.shape_cast %28 : vector<8x8x128xbf16> to vector<64x128xbf16>
    %c4 = arith.constant 4 : index
    %c0_36 = arith.constant 0 : index
    %c0_37 = arith.constant 0 : index
    %30 = vector.load %arg2[%c4, %c0_36, %c0_37] : memref<9x128x128xbf16, #tpu.memory_space<vmem>>, vector<1x128x128xbf16>
    %31 = vector.shape_cast %30 : vector<1x128x128xbf16> to vector<128x128xbf16>
    %cst_38 = arith.constant dense<0.000000e+00> : vector<64x128xf32>
    %32 = tpu.matmul %29, %31, %cst_38 {dimension_numbers = #tpu.dot_dimension_numbers<[1], [0], [0], [1], [0, 0, 1, 1], [], []>} : vector<64x128xbf16>, vector<128x128xbf16>, vector<64x128xf32> -> vector<64x128xf32>
    %33 = arith.addf %26, %32 : vector<64x128xf32>
    %c2_39 = arith.constant 2 : index
    %c0_40 = arith.constant 0 : index
    %c0_41 = arith.constant 0 : index
    %c1_42 = arith.constant 1 : index
    %c0_43 = arith.constant 0 : index
    %34 = vector.load %arg1[%c2_39, %c0_40, %c0_41, %c1_42, %c0_43] : memref<4x1x9x9x128xbf16, #tpu.memory_space<vmem>>, vector<1x1x8x8x128xbf16>
    %35 = vector.shape_cast %34 : vector<1x1x8x8x128xbf16> to vector<8x8x128xbf16>
    %36 = vector.shape_cast %35 : vector<8x8x128xbf16> to vector<64x128xbf16>
    %c5 = arith.constant 5 : index
    %c0_44 = arith.constant 0 : index
    %c0_45 = arith.constant 0 : index
    %37 = vector.load %arg2[%c5, %c0_44, %c0_45] : memref<9x128x128xbf16, #tpu.memory_space<vmem>>, vector<1x128x128xbf16>
    %38 = vector.shape_cast %37 : vector<1x128x128xbf16> to vector<128x128xbf16>
    %cst_46 = arith.constant dense<0.000000e+00> : vector<64x128xf32>
    %39 = tpu.matmul %36, %38, %cst_46 {dimension_numbers = #tpu.dot_dimension_numbers<[1], [0], [0], [1], [0, 0, 1, 1], [], []>} : vector<64x128xbf16>, vector<128x128xbf16>, vector<64x128xf32> -> vector<64x128xf32>
    %40 = arith.addf %33, %39 : vector<64x128xf32>
    %c0_47 = arith.constant 0 : index
    %c0_48 = arith.constant 0 : index
    %c1_49 = arith.constant 1 : index
    %c0_50 = arith.constant 0 : index
    %c0_51 = arith.constant 0 : index
    %41 = vector.load %arg1[%c0_47, %c0_48, %c1_49, %c0_50, %c0_51] : memref<4x1x9x9x128xbf16, #tpu.memory_space<vmem>>, vector<1x1x8x8x128xbf16>
    %42 = vector.shape_cast %41 : vector<1x1x8x8x128xbf16> to vector<8x8x128xbf16>
    %43 = vector.shape_cast %42 : vector<8x8x128xbf16> to vector<64x128xbf16>
    %c6 = arith.constant 6 : index
    %c0_52 = arith.constant 0 : index
    %c0_53 = arith.constant 0 : index
    %44 = vector.load %arg2[%c6, %c0_52, %c0_53] : memref<9x128x128xbf16, #tpu.memory_space<vmem>>, vector<1x128x128xbf16>
    %45 = vector.shape_cast %44 : vector<1x128x128xbf16> to vector<128x128xbf16>
    %cst_54 = arith.constant dense<0.000000e+00> : vector<64x128xf32>
    %46 = tpu.matmul %43, %45, %cst_54 {dimension_numbers = #tpu.dot_dimension_numbers<[1], [0], [0], [1], [0, 0, 1, 1], [], []>} : vector<64x128xbf16>, vector<128x128xbf16>, vector<64x128xf32> -> vector<64x128xf32>
    %47 = arith.addf %40, %46 : vector<64x128xf32>
    %c1_55 = arith.constant 1 : index
    %c0_56 = arith.constant 0 : index
    %c1_57 = arith.constant 1 : index
    %c0_58 = arith.constant 0 : index
    %c0_59 = arith.constant 0 : index
    %48 = vector.load %arg1[%c1_55, %c0_56, %c1_57, %c0_58, %c0_59] : memref<4x1x9x9x128xbf16, #tpu.memory_space<vmem>>, vector<1x1x8x8x128xbf16>
    %49 = vector.shape_cast %48 : vector<1x1x8x8x128xbf16> to vector<8x8x128xbf16>
    %50 = vector.shape_cast %49 : vector<8x8x128xbf16> to vector<64x128xbf16>
    %c7 = arith.constant 7 : index
    %c0_60 = arith.constant 0 : index
    %c0_61 = arith.constant 0 : index
    %51 = vector.load %arg2[%c7, %c0_60, %c0_61] : memref<9x128x128xbf16, #tpu.memory_space<vmem>>, vector<1x128x128xbf16>
    %52 = vector.shape_cast %51 : vector<1x128x128xbf16> to vector<128x128xbf16>
    %cst_62 = arith.constant dense<0.000000e+00> : vector<64x128xf32>
    %53 = tpu.matmul %50, %52, %cst_62 {dimension_numbers = #tpu.dot_dimension_numbers<[1], [0], [0], [1], [0, 0, 1, 1], [], []>} : vector<64x128xbf16>, vector<128x128xbf16>, vector<64x128xf32> -> vector<64x128xf32>
    %54 = arith.addf %47, %53 : vector<64x128xf32>
    %c0_63 = arith.constant 0 : index
    %c0_64 = arith.constant 0 : index
    %c1_65 = arith.constant 1 : index
    %c1_66 = arith.constant 1 : index
    %c0_67 = arith.constant 0 : index
    %55 = vector.load %arg1[%c0_63, %c0_64, %c1_65, %c1_66, %c0_67] : memref<4x1x9x9x128xbf16, #tpu.memory_space<vmem>>, vector<1x1x8x8x128xbf16>
    %56 = vector.shape_cast %55 : vector<1x1x8x8x128xbf16> to vector<8x8x128xbf16>
    %57 = vector.shape_cast %56 : vector<8x8x128xbf16> to vector<64x128xbf16>
    %c8 = arith.constant 8 : index
    %c0_68 = arith.constant 0 : index
    %c0_69 = arith.constant 0 : index
    %58 = vector.load %arg2[%c8, %c0_68, %c0_69] : memref<9x128x128xbf16, #tpu.memory_space<vmem>>, vector<1x128x128xbf16>
    %59 = vector.shape_cast %58 : vector<1x128x128xbf16> to vector<128x128xbf16>
    %cst_70 = arith.constant dense<0.000000e+00> : vector<64x128xf32>
    %60 = tpu.matmul %57, %59, %cst_70 {dimension_numbers = #tpu.dot_dimension_numbers<[1], [0], [0], [1], [0, 0, 1, 1], [], []>} : vector<64x128xbf16>, vector<128x128xbf16>, vector<64x128xf32> -> vector<64x128xf32>
    %61 = arith.addf %54, %60 : vector<64x128xf32>
    %c0_71 = arith.constant 0 : index
    %c0_72 = arith.constant 0 : index
    %62 = vector.load %arg3[%c0_71, %c0_72] : memref<1x128xf32, #tpu.memory_space<vmem>>, vector<1x128xf32>
    %63 = vector.broadcast %62 : vector<1x128xf32> to vector<64x128xf32>
    %64 = arith.addf %61, %63 : vector<64x128xf32>
    %cst_73 = arith.constant 0.000000e+00 : f32
    %65 = vector.broadcast %cst_73 : f32 to vector<64x128xf32>
    %66 = arith.maximumf %64, %65 : vector<64x128xf32>
    %67 = arith.truncf %66 : vector<64x128xf32> to vector<64x128xbf16>
    %c0_74 = arith.constant 0 : index
    %c0_75 = arith.constant 0 : index
    %c0_76 = arith.constant 0 : index
    %68 = vector.load %arg4[%c0_74, %c0_75, %c0_76] : memref<1x64x128xbf16, #tpu.memory_space<vmem>>, vector<1x64x128xbf16>
    %69 = vector.shape_cast %68 : vector<1x64x128xbf16> to vector<64x128xbf16>
    %70 = vector.shape_cast %67 : vector<64x128xbf16> to vector<1x64x128xbf16>
    tpu.vector_store %arg4[%c0_74, %c0_75, %c0_76], %70 {strides = array<i32>} : memref<1x64x128xbf16, #tpu.memory_space<vmem>>, vector<1x64x128xbf16>,
    return
  }
  func.func @transform_0(%arg0: i32) -> (i32, i32, i32, i32, i32) {
    %c0_i32 = arith.constant 0 : i32
    %c0_i32_0 = arith.constant 0 : i32
    %c0_i32_1 = arith.constant 0 : i32
    %c0_i32_2 = arith.constant 0 : i32
    %c0_i32_3 = arith.constant 0 : i32
    return %c0_i32, %arg0, %c0_i32_0, %c0_i32_1, %c0_i32_2 : i32, i32, i32, i32, i32
  }
  func.func @transform_1(%arg0: i32) -> (i32, i32, i32) {
    %c0_i32 = arith.constant 0 : i32
    %c0_i32_0 = arith.constant 0 : i32
    %c0_i32_1 = arith.constant 0 : i32
    %c0_i32_2 = arith.constant 0 : i32
    return %c0_i32, %c0_i32_0, %c0_i32_1 : i32, i32, i32
  }
  func.func @transform_2(%arg0: i32) -> (i32, i32) {
    %c0_i32 = arith.constant 0 : i32
    %c0_i32_0 = arith.constant 0 : i32
    %c0_i32_1 = arith.constant 0 : i32
    return %c0_i32, %c0_i32_0 : i32, i32
  }
  func.func @transform_3(%arg0: i32) -> (i32, i32, i32) {
    %c0_i32 = arith.constant 0 : i32
    %c0_i32_0 = arith.constant 0 : i32
    %c0_i32_1 = arith.constant 0 : i32
    return %arg0, %c0_i32, %c0_i32_0 : i32, i32, i32
  }
}

module attributes {stable_mosaic.version = 11 : i64} {
  func.func @_final_proj_kernel(%arg0: i32, %arg1: memref<64x128xbf16, #tpu.memory_space<vmem>>, %arg2: memref<128x128xbf16, #tpu.memory_space<vmem>>, %arg3: memref<1x128xf32, #tpu.memory_space<vmem>>, %arg4: memref<64x128xbf16, #tpu.memory_space<vmem>>, %arg5: memref<128x128xbf16, #tpu.memory_space<vmem>>, %arg6: memref<1x128xf32, #tpu.memory_space<vmem>>, %arg7: memref<64x128xf32, #tpu.memory_space<vmem>>) attributes {dimension_semantics = [#tpu.dimension_semantics<parallel>], iteration_bounds = array<i64: 2>, scalar_prefetch = 0 : i64, scratch_operands = 0 : i64, tpu.core_type = #tpu.core_type<tc>, window_params = [{transform_indices = @transform_0, window_bounds = array<i64: 64, 128>}, {pipeline_mode = #tpu.pipeline_mode<synchronous>, transform_indices = @transform_1, window_bounds = array<i64: 128, 128>}, {pipeline_mode = #tpu.pipeline_mode<synchronous>, transform_indices = @transform_2, window_bounds = array<i64: 1, 128>}, {transform_indices = @transform_3, window_bounds = array<i64: 64, 128>}, {pipeline_mode = #tpu.pipeline_mode<synchronous>, transform_indices = @transform_4, window_bounds = array<i64: 128, 128>}, {pipeline_mode = #tpu.pipeline_mode<synchronous>, transform_indices = @transform_5, window_bounds = array<i64: 1, 128>}, {transform_indices = @transform_6, window_bounds = array<i64: 64, 128>}]} {
    %c0 = arith.constant 0 : index
    %c0_0 = arith.constant 0 : index
    %0 = vector.load %arg1[%c0, %c0_0] : memref<64x128xbf16, #tpu.memory_space<vmem>>, vector<64x128xbf16>
    %c0_1 = arith.constant 0 : index
    %c0_2 = arith.constant 0 : index
    %1 = vector.load %arg2[%c0_1, %c0_2] : memref<128x128xbf16, #tpu.memory_space<vmem>>, vector<128x128xbf16>
    %cst = arith.constant dense<0.000000e+00> : vector<64x128xf32>
    %2 = tpu.matmul %0, %1, %cst {dimension_numbers = #tpu.dot_dimension_numbers<[1], [0], [0], [1], [0, 0, 1, 1], [], []>} : vector<64x128xbf16>, vector<128x128xbf16>, vector<64x128xf32> -> vector<64x128xf32>
    %c0_3 = arith.constant 0 : index
    %c0_4 = arith.constant 0 : index
    %3 = vector.load %arg4[%c0_3, %c0_4] : memref<64x128xbf16, #tpu.memory_space<vmem>>, vector<64x128xbf16>
    %c0_5 = arith.constant 0 : index
    %c0_6 = arith.constant 0 : index
    %4 = vector.load %arg5[%c0_5, %c0_6] : memref<128x128xbf16, #tpu.memory_space<vmem>>, vector<128x128xbf16>
    %cst_7 = arith.constant dense<0.000000e+00> : vector<64x128xf32>
    %5 = tpu.matmul %3, %4, %cst_7 {dimension_numbers = #tpu.dot_dimension_numbers<[1], [0], [0], [1], [0, 0, 1, 1], [], []>} : vector<64x128xbf16>, vector<128x128xbf16>, vector<64x128xf32> -> vector<64x128xf32>
    %6 = arith.addf %2, %5 : vector<64x128xf32>
    %c0_8 = arith.constant 0 : index
    %c0_9 = arith.constant 0 : index
    %7 = vector.load %arg3[%c0_8, %c0_9] : memref<1x128xf32, #tpu.memory_space<vmem>>, vector<1x128xf32>
    %8 = vector.broadcast %7 : vector<1x128xf32> to vector<64x128xf32>
    %9 = arith.addf %6, %8 : vector<64x128xf32>
    %c0_10 = arith.constant 0 : index
    %c0_11 = arith.constant 0 : index
    %10 = vector.load %arg6[%c0_10, %c0_11] : memref<1x128xf32, #tpu.memory_space<vmem>>, vector<1x128xf32>
    %11 = vector.broadcast %10 : vector<1x128xf32> to vector<64x128xf32>
    %12 = arith.addf %9, %11 : vector<64x128xf32>
    %cst_12 = arith.constant 0.000000e+00 : f32
    %13 = vector.broadcast %cst_12 : f32 to vector<64x128xf32>
    %14 = arith.maximumf %12, %13 : vector<64x128xf32>
    %c0_13 = arith.constant 0 : index
    %c0_14 = arith.constant 0 : index
    %15 = vector.load %arg7[%c0_13, %c0_14] : memref<64x128xf32, #tpu.memory_space<vmem>>, vector<64x128xf32>
    tpu.vector_store %arg7[%c0_13, %c0_14], %14 {strides = array<i32>} : memref<64x128xf32, #tpu.memory_space<vmem>>, vector<64x128xf32>,
    return
  }
  func.func @transform_0(%arg0: i32) -> (i32, i32) {
    %c0_i32 = arith.constant 0 : i32
    %c0_i32_0 = arith.constant 0 : i32
    return %arg0, %c0_i32 : i32, i32
  }
  func.func @transform_1(%arg0: i32) -> (i32, i32) {
    %c0_i32 = arith.constant 0 : i32
    %c0_i32_0 = arith.constant 0 : i32
    %c0_i32_1 = arith.constant 0 : i32
    return %c0_i32, %c0_i32_0 : i32, i32
  }
  func.func @transform_2(%arg0: i32) -> (i32, i32) {
    %c0_i32 = arith.constant 0 : i32
    %c0_i32_0 = arith.constant 0 : i32
    %c0_i32_1 = arith.constant 0 : i32
    return %c0_i32, %c0_i32_0 : i32, i32
  }
  func.func @transform_3(%arg0: i32) -> (i32, i32) {
    %c0_i32 = arith.constant 0 : i32
    %c0_i32_0 = arith.constant 0 : i32
    return %arg0, %c0_i32 : i32, i32
  }
  func.func @transform_4(%arg0: i32) -> (i32, i32) {
    %c0_i32 = arith.constant 0 : i32
    %c0_i32_0 = arith.constant 0 : i32
    %c0_i32_1 = arith.constant 0 : i32
    return %c0_i32, %c0_i32_0 : i32, i32
  }
  func.func @transform_5(%arg0: i32) -> (i32, i32) {
    %c0_i32 = arith.constant 0 : i32
    %c0_i32_0 = arith.constant 0 : i32
    %c0_i32_1 = arith.constant 0 : i32
    return %c0_i32, %c0_i32_0 : i32, i32
  }
  func.func @transform_6(%arg0: i32) -> (i32, i32) {
    %c0_i32 = arith.constant 0 : i32
    %c0_i32_0 = arith.constant 0 : i32
    return %arg0, %c0_i32 : i32, i32
  }
}

</mosaic_0001>

<bundles_post_ra>
// kernel: bottleneck_pallas.3
= control target key start
LH: loop header
LB: loop body
LE: loop exit
PB: predicated region body
PF: predicated region fallthrough
CT: control target
= control target key end

     0   :  { %s898_s12 = smov 0   ;;  %s1019_s0 = inlined_call_operand.vmem [shape: bf16[512,128], index: 0, kind: input, shape index: {}]   ;;  %s1020_s1 = inlined_call_operand.vmem [shape: bf16[128,128], index: 1, kind: input, shape index: {}]   ;;  %s1021_s2 = inlined_call_operand.vmem [shape: f32[1,128], index: 2, kind: input, shape index: {}]   ;;  %s1022_s3 = inlined_call_operand.vmem [shape: bf16[512,128], index: 3, kind: output, shape index: {}]  }
   0x1 LB: > { %s611_s13 = sadd.s32 4294967295, %s876_s12   ;;  %p615_p0 = scmp.ge.s32.totalorder %s876_s12, 1  ;;  %s876_s12 = sphi %s898_s12, %s13_s12  }
   0x2   : > { %p138_p1 = scmp.lt.s32.totalorder %s876_s12, 3 }
   0x4   : > { %p139_p2 = pnand %p615_p0, %p138_p1 }
   0x5   : > { %s616_s22 = sshll.u32 (!%p139_p2), %s611_s13, 5 }
   0x6   : > { %142 = sbr.rel (%p139_p2) target bundleno = 240 (0xf0), region = 32  ;;  %p163_p3 = scmp.lt.s32.totalorder (!%p139_p2), %s616_s22, 63 }
   0xb   : > { %v741_v0 = vld [vmem:[%s1020_s1 + $0x38] sm:$0xff]  ;;  %v740_v1 = vld [vmem:[%s1020_s1 + $0x30] sm:$0xff]  ;;  %v739_v2 = vld [vmem:[%s1020_s1 + $0x28] sm:$0xff]  ;;  %s1024_s22 = smov (!%p163_p3, %s616_s22), 63 }
   0xc   : > { %370 = vmatpush.bf16.msra.mxu0 %v741_v0  ;;  %837 = vmatpush.bf16.msra.mxu1 %v741_v0  ;;  %v738_v3 = vld [vmem:[%s1020_s1 + $0x20] sm:$0xff]  ;;  %v737_v4 = vld [vmem:[%s1020_s1 + $0x18] sm:$0xff]  ;;  %v736_v5 = vld [vmem:[%s1020_s1 + $0x10] sm:$0xff]  ;;  %s617_s29 = sshll.u32 %s1024_s22, 2 }
   0xd   : > { %838 = vmatpush.bf16.msra.mxu2 %v741_v0  ;;  %839 = vmatpush.bf16.msra.mxu3 %v741_v0  ;;  %v735_v6 = vld [vmem:[%s1020_s1 + $0x8] sm:$0xff]  ;;  %v734_v7 = vld [vmem:[%s1020_s1] sm:$0xff]  ;;  %s938_s7 = scalar_lea.vmem %s1019_s0, %s617_s29  ;;  %s970_s13 = scalar_lea.vmem %s1022_s3, %s617_s29 }
   0xe   : > { %v718_v8 = vld [vmem:[%s938_s7] sm:$0xff]  ;;  %v719_v12 = vld [vmem:[%s938_s7 + $0x8] sm:$0xff]  ;;  %v720_v16 = vld [vmem:[%s938_s7 + $0x10] sm:$0xff] }
   0xf   : > { %v722_v9 = vld [vmem:[%s938_s7 + $0x20] sm:$0xff]  ;;  %v723_v13 = vld [vmem:[%s938_s7 + $0x28] sm:$0xff]  ;;  %v724_v17 = vld [vmem:[%s938_s7 + $0x30] sm:$0xff] }
  0x10   : > { %371 = vmatpush.bf16.msra.mxu0 %v740_v1  ;;  %840 = vmatpush.bf16.msra.mxu1 %v740_v1  ;;  %v726_v10 = vld [vmem:[%s938_s7 + $0x40] sm:$0xff]  ;;  %v727_v14 = vld [vmem:[%s938_s7 + $0x48] sm:$0xff]  ;;  %v728_v18 = vld [vmem:[%s938_s7 + $0x50] sm:$0xff] }
  0x11   : > { %841 = vmatpush.bf16.msra.mxu2 %v740_v1  ;;  %842 = vmatpush.bf16.msra.mxu3 %v740_v1  ;;  %v730_v11 = vld [vmem:[%s938_s7 + $0x60] sm:$0xff]  ;;  %v731_v15 = vld [vmem:[%s938_s7 + $0x68] sm:$0xff]  ;;  %v732_v19 = vld [vmem:[%s938_s7 + $0x70] sm:$0xff] }
  0x12   : > { %v721_v20 = vld [vmem:[%s938_s7 + $0x18] sm:$0xff]  ;;  %v959_v26 = vld [vmem:[%s1021_s2] ss:$0 sm:$0xff] }
  0x13   : > { %v725_v21 = vld [vmem:[%s938_s7 + $0x38] sm:$0xff] }
  0x14   : > { %372 = vmatpush.bf16.msra.mxu0 %v739_v2  ;;  %843 = vmatpush.bf16.msra.mxu1 %v739_v2  ;;  %v729_v22 = vld [vmem:[%s938_s7 + $0x58] sm:$0xff] }
  0x15   : > { %844 = vmatpush.bf16.msra.mxu2 %v739_v2  ;;  %845 = vmatpush.bf16.msra.mxu3 %v739_v2  ;;  %v733_v23 = vld [vmem:[%s938_s7 + $0x78] sm:$0xff] }
  0x18   : > { %373 = vmatpush.bf16.msra.mxu0 %v738_v3  ;;  %846 = vmatpush.bf16.msra.mxu1 %v738_v3 }
  0x19   : > { %847 = vmatpush.bf16.msra.mxu2 %v738_v3  ;;  %848 = vmatpush.bf16.msra.mxu3 %v738_v3 }
  0x1c   : > { %374 = vmatpush.bf16.msra.mxu0 %v737_v4  ;;  %849 = vmatpush.bf16.msra.mxu1 %v737_v4 }
  0x1d   : > { %850 = vmatpush.bf16.msra.mxu2 %v737_v4  ;;  %851 = vmatpush.bf16.msra.mxu3 %v737_v4 }
  0x20   : > { %375 = vmatpush.bf16.msra.mxu0 %v736_v5  ;;  %852 = vmatpush.bf16.msra.mxu1 %v736_v5 }
  0x21   : > { %853 = vmatpush.bf16.msra.mxu2 %v736_v5  ;;  %854 = vmatpush.bf16.msra.mxu3 %v736_v5 }
  0x24   : > { %376 = vmatpush.bf16.msra.mxu0 %v735_v6  ;;  %855 = vmatpush.bf16.msra.mxu1 %v735_v6 }
  0x25   : > { %856 = vmatpush.bf16.msra.mxu2 %v735_v6  ;;  %857 = vmatpush.bf16.msra.mxu3 %v735_v6 }
  0x28   : > { %377 = vmatpush.bf16.msra.mxu0 %v734_v7  ;;  %858 = vmatpush.bf16.msra.mxu1 %v734_v7 }
  0x29   : > { %859 = vmatpush.bf16.msra.mxu2 %v734_v7  ;;  %860 = vmatpush.bf16.msra.mxu3 %v734_v7 }
  0x2b   : > { %378 = vmatmul.bf16.vlgmr.msra.gmra.mxu0 %v718_v8  ;;  %398 = vmatmul.bf16.vlgmr.msra.gmra.mxu1 %v722_v9 }
  0x2c   : > { %418 = vmatmul.bf16.vlgmr.msra.gmra.mxu2 %v726_v10  ;;  %438 = vmatmul.bf16.vlgmr.msra.gmra.mxu3 %v730_v11 }
  0x3b   : > { %383 = vmatmul.bf16.gmra.mxu0 %v719_v12  ;;  %403 = vmatmul.bf16.gmra.mxu1 %v723_v13 }
  0x3c   : > { %423 = vmatmul.bf16.gmra.mxu2 %v727_v14  ;;  %443 = vmatmul.bf16.gmra.mxu3 %v731_v15 }
  0x4b   : > { %388 = vmatmul.bf16.gmra.mxu0 %v720_v16  ;;  %408 = vmatmul.bf16.gmra.mxu1 %v724_v17 }
  0x4c   : > { %428 = vmatmul.bf16.gmra.mxu2 %v728_v18  ;;  %448 = vmatmul.bf16.gmra.mxu3 %v732_v19 }
  0x5b   : > { %393 = vmatmul.bf16.gmra.mxu0 %v721_v20  ;;  %413 = vmatmul.bf16.gmra.mxu1 %v725_v21 }
  0x5c   : > { %433 = vmatmul.bf16.gmra.mxu2 %v729_v22  ;;  %453 = vmatmul.bf16.gmra.mxu3 %v733_v23 }
  0xa8   : > { %v379_v24 = vpop.f32.mrf.mxu0  ;;  %v399_v25 = vpop.f32.mrf.mxu1 }
  0xa9   : > { %v380_v27 = vadd.f32 %v959_v26, %v379_v24  ;;  %v400_v28 = vadd.f32 %v959_v26, %v399_v25 }
  0xab   : > { %v459_v35 = vmax.f32 %v380_v27, 0.0  ;;  %v467_v36 = vmax.f32 %v400_v28, 0.0 }
  0xaf   : > { %v419_v29 = vpop.f32.mrf.mxu2  ;;  %v439_v30 = vpop.f32.mrf.mxu3 }
  0xb0   : > { %v381_v31 = vpop.f32.mrf.mxu0  ;;  %v401_v32 = vpop.f32.mrf.mxu1  ;;  %v420_v41 = vadd.f32 %v959_v26, %v419_v29  ;;  %v440_v42 = vadd.f32 %v959_v26, %v439_v30 }
  0xb1   : > { %v382_v33 = vadd.f32 %v959_v26, %v381_v31  ;;  %v402_v34 = vadd.f32 %v959_v26, %v401_v32 }
  0xb2   : > { %v475_v49 = vmax.f32 %v420_v41, 0.0  ;;  %v483_v50 = vmax.f32 %v440_v42, 0.0 }
  0xb3   : > { %v460_v37 = vmax.f32 %v382_v33, 0.0  ;;  %v468_v38 = vmax.f32 %v402_v34, 0.0 }
  0xb5   : > { %v745_v39 = vpack.c.bf16 %v460_v37, %v459_v35  ;;  %v765_v40 = vpack.c.bf16 %v468_v38, %v467_v36 }
  0xb7   : > { %746 = vst [vmem:[%s970_s13] sm:$0xff] %v745_v39   ;;  %v421_v43 = vpop.f32.mrf.mxu2  ;;  %v441_v44 = vpop.f32.mrf.mxu3 }
  0xb8   : > { %825 = vst [vmem:[%s970_s13 + $0x20] sm:$0xff] %v765_v40   ;;  %v422_v45 = vadd.f32 %v959_v26, %v421_v43  ;;  %v442_v46 = vadd.f32 %v959_v26, %v441_v44  ;;  %v384_v47 = vpop.f32.mrf.mxu0  ;;  %v404_v48 = vpop.f32.mrf.mxu1 }
  0xb9   : > { %v385_v55 = vadd.f32 %v959_v26, %v384_v47  ;;  %v405_v56 = vadd.f32 %v959_v26, %v404_v48 }
  0xba   : > { %v476_v51 = vmax.f32 %v422_v45, 0.0  ;;  %v484_v52 = vmax.f32 %v442_v46, 0.0 }
  0xbb   : > { %v461_v63 = vmax.f32 %v385_v55, 0.0  ;;  %v469_v0 = vmax.f32 %v405_v56, 0.0 }
  0xbc   : > { %v785_v53 = vpack.c.bf16 %v476_v51, %v475_v49  ;;  %v805_v54 = vpack.c.bf16 %v484_v52, %v483_v50 }
  0xbe   : > { %829 = vst [vmem:[%s970_s13 + $0x40] sm:$0xff] %v785_v53  }
  0xbf   : > { %833 = vst [vmem:[%s970_s13 + $0x60] sm:$0xff] %v805_v54   ;;  %v424_v57 = vpop.f32.mrf.mxu2  ;;  %v444_v58 = vpop.f32.mrf.mxu3 }
  0xc0   : > { %v386_v59 = vpop.f32.mrf.mxu0  ;;  %v406_v60 = vpop.f32.mrf.mxu1  ;;  %v425_v5 = vadd.f32 %v959_v26, %v424_v57  ;;  %v445_v6 = vadd.f32 %v959_v26, %v444_v58 }
  0xc1   : > { %v387_v61 = vadd.f32 %v959_v26, %v386_v59  ;;  %v407_v62 = vadd.f32 %v959_v26, %v406_v60 }
  0xc2   : > { %v477_v13 = vmax.f32 %v425_v5, 0.0  ;;  %v485_v14 = vmax.f32 %v445_v6, 0.0 }
  0xc3   : > { %v462_v1 = vmax.f32 %v387_v61, 0.0  ;;  %v470_v2 = vmax.f32 %v407_v62, 0.0 }
  0xc5   : > { %v750_v3 = vpack.c.bf16 %v462_v1, %v461_v63  ;;  %v770_v4 = vpack.c.bf16 %v470_v2, %v469_v0 }
  0xc7   : > { %822 = vst [vmem:[%s970_s13 + $0x8] sm:$0xff] %v750_v3   ;;  %v426_v7 = vpop.f32.mrf.mxu2  ;;  %v446_v8 = vpop.f32.mrf.mxu3 }
  0xc8   : > { %826 = vst [vmem:[%s970_s13 + $0x28] sm:$0xff] %v770_v4   ;;  %v427_v9 = vadd.f32 %v959_v26, %v426_v7  ;;  %v447_v10 = vadd.f32 %v959_v26, %v446_v8  ;;  %v389_v11 = vpop.f32.mrf.mxu0  ;;  %v409_v12 = vpop.f32.mrf.mxu1 }
  0xc9   : > { %v390_v19 = vadd.f32 %v959_v26, %v389_v11  ;;  %v410_v20 = vadd.f32 %v959_v26, %v409_v12 }
  0xca   : > { %v478_v15 = vmax.f32 %v427_v9, 0.0  ;;  %v486_v16 = vmax.f32 %v447_v10, 0.0 }
  0xcb   : > { %v463_v28 = vmax.f32 %v390_v19, 0.0  ;;  %v471_v29 = vmax.f32 %v410_v20, 0.0 }
  0xcc   : > { %v790_v17 = vpack.c.bf16 %v478_v15, %v477_v13  ;;  %v810_v18 = vpack.c.bf16 %v486_v16, %v485_v14 }
  0xce   : > { %830 = vst [vmem:[%s970_s13 + $0x48] sm:$0xff] %v790_v17  }
  0xcf   : > { %834 = vst [vmem:[%s970_s13 + $0x68] sm:$0xff] %v810_v18   ;;  %v429_v21 = vpop.f32.mrf.mxu2  ;;  %v449_v22 = vpop.f32.mrf.mxu3 }
  0xd0   : > { %v391_v23 = vpop.f32.mrf.mxu0  ;;  %v411_v24 = vpop.f32.mrf.mxu1  ;;  %v430_v34 = vadd.f32 %v959_v26, %v429_v21  ;;  %v450_v35 = vadd.f32 %v959_v26, %v449_v22 }
  0xd1   : > { %v392_v25 = vadd.f32 %v959_v26, %v391_v23  ;;  %v412_v27 = vadd.f32 %v959_v26, %v411_v24 }
  0xd2   : > { %v479_v42 = vmax.f32 %v430_v34, 0.0  ;;  %v487_v43 = vmax.f32 %v450_v35, 0.0 }
  0xd3   : > { %v464_v30 = vmax.f32 %v392_v25, 0.0  ;;  %v472_v31 = vmax.f32 %v412_v27, 0.0 }
  0xd5   : > { %v755_v32 = vpack.c.bf16 %v464_v30, %v463_v28  ;;  %v775_v33 = vpack.c.bf16 %v472_v31, %v471_v29 }
  0xd7   : > { %823 = vst [vmem:[%s970_s13 + $0x10] sm:$0xff] %v755_v32   ;;  %v431_v36 = vpop.f32.mrf.mxu2  ;;  %v451_v37 = vpop.f32.mrf.mxu3 }
  0xd8   : > { %827 = vst [vmem:[%s970_s13 + $0x30] sm:$0xff] %v775_v33   ;;  %v432_v38 = vadd.f32 %v959_v26, %v431_v36  ;;  %v452_v39 = vadd.f32 %v959_v26, %v451_v37  ;;  %v394_v40 = vpop.f32.mrf.mxu0  ;;  %v414_v41 = vpop.f32.mrf.mxu1 }
  0xd9   : > { %v395_v48 = vadd.f32 %v959_v26, %v394_v40  ;;  %v415_v49 = vadd.f32 %v959_v26, %v414_v41 }
  0xda   : > { %v480_v44 = vmax.f32 %v432_v38, 0.0  ;;  %v488_v45 = vmax.f32 %v452_v39, 0.0 }
  0xdb   : > { %v465_v56 = vmax.f32 %v395_v48, 0.0  ;;  %v473_v57 = vmax.f32 %v415_v49, 0.0 }
  0xdc   : > { %v795_v46 = vpack.c.bf16 %v480_v44, %v479_v42  ;;  %v815_v47 = vpack.c.bf16 %v488_v45, %v487_v43 }
  0xde   : > { %831 = vst [vmem:[%s970_s13 + $0x50] sm:$0xff] %v795_v46  }
  0xdf   : > { %835 = vst [vmem:[%s970_s13 + $0x70] sm:$0xff] %v815_v47   ;;  %v434_v50 = vpop.f32.mrf.mxu2  ;;  %v454_v51 = vpop.f32.mrf.mxu3 }
  0xe0   : > { %v396_v52 = vpop.f32.mrf.mxu0  ;;  %v416_v53 = vpop.f32.mrf.mxu1  ;;  %v435_v62 = vadd.f32 %v959_v26, %v434_v50  ;;  %v455_v63 = vadd.f32 %v959_v26, %v454_v51 }
  0xe1   : > { %v397_v54 = vadd.f32 %v959_v26, %v396_v52  ;;  %v417_v55 = vadd.f32 %v959_v26, %v416_v53 }
  0xe2   : > { %v481_v4 = vmax.f32 %v435_v62, 0.0  ;;  %v489_v5 = vmax.f32 %v455_v63, 0.0 }
  0xe3   : > { %v466_v58 = vmax.f32 %v397_v54, 0.0  ;;  %v474_v59 = vmax.f32 %v417_v55, 0.0 }
  0xe5   : > { %v760_v60 = vpack.c.bf16 %v466_v58, %v465_v56  ;;  %v780_v61 = vpack.c.bf16 %v474_v59, %v473_v57 }
  0xe7   : > { %824 = vst [vmem:[%s970_s13 + $0x18] sm:$0xff] %v760_v60   ;;  %v436_v0 = vpop.f32.mrf.mxu2  ;;  %v456_v1 = vpop.f32.mrf.mxu3 }
  0xe8   : > { %828 = vst [vmem:[%s970_s13 + $0x38] sm:$0xff] %v780_v61   ;;  %v437_v2 = vadd.f32 %v959_v26, %v436_v0  ;;  %v457_v3 = vadd.f32 %v959_v26, %v456_v1 }
  0xea   : > { %v482_v6 = vmax.f32 %v437_v2, 0.0  ;;  %v490_v7 = vmax.f32 %v457_v3, 0.0 }
  0xec   : > { %v800_v8 = vpack.c.bf16 %v482_v6, %v481_v4  ;;  %v820_v9 = vpack.c.bf16 %v490_v7, %v489_v5 }
  0xee   : > { %832 = vst [vmem:[%s970_s13 + $0x58] sm:$0xff] %v800_v8  }
  0xef   : > { %836 = vst [vmem:[%s970_s13 + $0x78] sm:$0xff] %v820_v9  }
  0xf0 PF: > { %s13_s12 = sadd.s32 1, %s876_s12  }
  0xf1   : > { %p10_p4 = scmp.ge.s32.totalorder %s13_s12, 4  }
  0xf3   :  { %12 = sbr.rel (!%p10_p4) target bundleno = 1 (0x1), region = 62 }

// kernel: bottleneck_pallas.4
= control target key start
LH: loop header
LB: loop body
LE: loop exit
PB: predicated region body
PF: predicated region fallthrough
CT: control target
= control target key end

     0   :  { %s2931_s12 = smov 0   ;;  %s2933_s13 = smov 0   ;;  %s3479_s0 = inlined_call_operand.vmem [shape: bf16[4,2,9,9,128], index: 0, kind: input, shape index: {}]   ;;  %s3480_s1 = inlined_call_operand.vmem [shape: bf16[9,128,128], index: 1, kind: input, shape index: {}]   ;;  %s3481_s2 = inlined_call_operand.vmem [shape: f32[1,128], index: 2, kind: input, shape index: {}]   ;;  %s3482_s3 = inlined_call_operand.vmem [shape: bf16[2,64,128], index: 3, kind: output, shape index: {}]  }
   0x1   :  { %s2935_s14 = smov 0  }
   0x2 LB: > { %s2129_s15 = sadd.s32 4294967295, %s2909_s14   ;;  %s2948_s16 = sadd.s32 1, %s2909_s14   ;;  %s2909_s14 = sphi %s2935_s14, %s3487_s14   ;;  %s2905_s13 = sphi %s2933_s13, %s3486_s13   ;;  %s2901_s12 = sphi %s2931_s12, %s3485_s12  }
   0x3   : > { %s17_s17 = ssub.s32 %s2909_s14, %s2948_s16  ;;  %s20_s18 = sadd.s32 1, %s2905_s13 }
   0x4   : > { %p18_p0 = scmp.eq.s32.totalorder %s17_s17, 0  ;;  %p27_p1 = scmp.ne.s32.totalorder %s2905_s13, %s2901_s12 }
   0x5   : > { %p28_p2 = scmp.eq.s32.totalorder %s2909_s14, 0  ;;  %p2132_p4 = scmp.ge.s32.totalorder %s2909_s14, 2 }
   0x6   : > { %s2957_s19 = scalar_select %p18_p0, %s2905_s13, %s20_s18  }
   0x7   : > { %p29_p3 = por %p28_p2, %p27_p1  ;;  %127 = sbr.rel (%p2132_p4) target bundleno = 53 (0x35), region = 24 }
   0xc   : > { %130 = sbr.rel (!%p29_p3) target bundleno = 53 (0x35), region = 28  ;;  %s132_s20 = sand.u32 (%p29_p3), 1, %s2905_s13  }
   0xd   : > { %s2860_s21 = smul.u32 (%p29_p3), 72, %s2909_s14 }
   0xe   : > { %s2859_s22 = smul.u32 (%p29_p3), 288, %s132_s20 }
   0xf   : > { %s2965_s25 = scalar_lea.vmem (%p29_p3), %s3479_s0, %s2860_s21 }
  0x10   : > { %v154_v0 = vld [vmem:[%s2965_s25] sm:$0xff] (%p29_p3)   ;;  %v158_v1 = vld [vmem:[%s2965_s25 + $0x8] sm:$0xff] (%p29_p3)   ;;  %v162_v2 = vld [vmem:[%s2965_s25 + $0x10] sm:$0xff] (%p29_p3)   ;;  %s2970_s26 = scalar_lea.vmem (%p29_p3), [#allocation2], %s2859_s22 }
  0x11   : > { %155 = vst [vmem:[%s2970_s26] sm:$0xff] %v154_v0   ;;  %v166_v3 = vld [vmem:[%s2965_s25 + $0x18] sm:$0xff]   ;;  %v170_v4 = vld [vmem:[%s2965_s25 + $0x20] sm:$0xff]   ;;  %v174_v5 = vld [vmem:[%s2965_s25 + $0x28] sm:$0xff]  }
  0x12   : > { %159 = vst [vmem:[%s2970_s26 + $0x8] sm:$0xff] %v158_v1   ;;  %v178_v6 = vld [vmem:[%s2965_s25 + $0x30] sm:$0xff]   ;;  %v182_v7 = vld [vmem:[%s2965_s25 + $0x38] sm:$0xff]   ;;  %v186_v8 = vld [vmem:[%s2965_s25 + $0x40] sm:$0xff]  }
  0x13   : > { %163 = vst [vmem:[%s2970_s26 + $0x10] sm:$0xff] %v162_v2   ;;  %v190_v9 = vld [vmem:[%s2965_s25 + $0x90] sm:$0xff]   ;;  %v194_v10 = vld [vmem:[%s2965_s25 + $0x98] sm:$0xff]   ;;  %v198_v11 = vld [vmem:[%s2965_s25 + $0xa0] sm:$0xff]  }
  0x14   : > { %167 = vst [vmem:[%s2970_s26 + $0x18] sm:$0xff] %v166_v3   ;;  %v202_v12 = vld [vmem:[%s2965_s25 + $0xa8] sm:$0xff]   ;;  %v206_v13 = vld [vmem:[%s2965_s25 + $0xb0] sm:$0xff]   ;;  %v210_v14 = vld [vmem:[%s2965_s25 + $0xb8] sm:$0xff]  }
  0x15   : > { %171 = vst [vmem:[%s2970_s26 + $0x20] sm:$0xff] %v170_v4   ;;  %v214_v15 = vld [vmem:[%s2965_s25 + $0xc0] sm:$0xff]   ;;  %v218_v16 = vld [vmem:[%s2965_s25 + $0xc8] sm:$0xff]   ;;  %v222_v17 = vld [vmem:[%s2965_s25 + $0xd0] sm:$0xff]  }
  0x16   : > { %175 = vst [vmem:[%s2970_s26 + $0x28] sm:$0xff] %v174_v5   ;;  %v226_v18 = vld [vmem:[%s2965_s25 + $0x120] sm:$0xff]   ;;  %v230_v19 = vld [vmem:[%s2965_s25 + $0x128] sm:$0xff]   ;;  %v234_v20 = vld [vmem:[%s2965_s25 + $0x130] sm:$0xff]  }
  0x17   : > { %179 = vst [vmem:[%s2970_s26 + $0x30] sm:$0xff] %v178_v6   ;;  %v238_v21 = vld [vmem:[%s2965_s25 + $0x138] sm:$0xff]   ;;  %v242_v22 = vld [vmem:[%s2965_s25 + $0x140] sm:$0xff]   ;;  %v246_v23 = vld [vmem:[%s2965_s25 + $0x148] sm:$0xff]  }
  0x18   : > { %183 = vst [vmem:[%s2970_s26 + $0x38] sm:$0xff] %v182_v7   ;;  %v250_v24 = vld [vmem:[%s2965_s25 + $0x150] sm:$0xff]   ;;  %v254_v25 = vld [vmem:[%s2965_s25 + $0x158] sm:$0xff]   ;;  %v258_v26 = vld [vmem:[%s2965_s25 + $0x160] sm:$0xff]  }
  0x19   : > { %187 = vst [vmem:[%s2970_s26 + $0x40] sm:$0xff] %v186_v8   ;;  %v262_v27 = vld [vmem:[%s2965_s25 + $0x1b0] sm:$0xff]   ;;  %v266_v28 = vld [vmem:[%s2965_s25 + $0x1b8] sm:$0xff]   ;;  %v270_v29 = vld [vmem:[%s2965_s25 + $0x1c0] sm:$0xff]  }
  0x1a   : > { %191 = vst [vmem:[%s2970_s26 + $0x48] sm:$0xff] %v190_v9   ;;  %v274_v30 = vld [vmem:[%s2965_s25 + $0x1c8] sm:$0xff]   ;;  %v278_v31 = vld [vmem:[%s2965_s25 + $0x1d0] sm:$0xff]   ;;  %v282_v32 = vld [vmem:[%s2965_s25 + $0x1d8] sm:$0xff]  }
  0x1b   : > { %195 = vst [vmem:[%s2970_s26 + $0x50] sm:$0xff] %v194_v10   ;;  %v286_v33 = vld [vmem:[%s2965_s25 + $0x1e0] sm:$0xff]   ;;  %v290_v34 = vld [vmem:[%s2965_s25 + $0x1e8] sm:$0xff]   ;;  %v294_v35 = vld [vmem:[%s2965_s25 + $0x1f0] sm:$0xff]  }
  0x1c   : > { %199 = vst [vmem:[%s2970_s26 + $0x58] sm:$0xff] %v198_v11  }
  0x1d   : > { %203 = vst [vmem:[%s2970_s26 + $0x60] sm:$0xff] %v202_v12  }
  0x1e   : > { %207 = vst [vmem:[%s2970_s26 + $0x68] sm:$0xff] %v206_v13  }
  0x1f   : > { %211 = vst [vmem:[%s2970_s26 + $0x70] sm:$0xff] %v210_v14  }
  0x20   : > { %215 = vst [vmem:[%s2970_s26 + $0x78] sm:$0xff] %v214_v15  }
  0x21   : > { %219 = vst [vmem:[%s2970_s26 + $0x80] sm:$0xff] %v218_v16  }
  0x22   : > { %223 = vst [vmem:[%s2970_s26 + $0x88] sm:$0xff] %v222_v17  }
  0x23   : > { %227 = vst [vmem:[%s2970_s26 + $0x90] sm:$0xff] %v226_v18  }
  0x24   : > { %231 = vst [vmem:[%s2970_s26 + $0x98] sm:$0xff] %v230_v19  }
  0x25   : > { %235 = vst [vmem:[%s2970_s26 + $0xa0] sm:$0xff] %v234_v20  }
  0x26   : > { %239 = vst [vmem:[%s2970_s26 + $0xa8] sm:$0xff] %v238_v21  }
  0x27   : > { %243 = vst [vmem:[%s2970_s26 + $0xb0] sm:$0xff] %v242_v22  }
  0x28   : > { %247 = vst [vmem:[%s2970_s26 + $0xb8] sm:$0xff] %v246_v23  }
  0x29   : > { %251 = vst [vmem:[%s2970_s26 + $0xc0] sm:$0xff] %v250_v24  }
  0x2a   : > { %255 = vst [vmem:[%s2970_s26 + $0xc8] sm:$0xff] %v254_v25  }
  0x2b   : > { %259 = vst [vmem:[%s2970_s26 + $0xd0] sm:$0xff] %v258_v26  }
  0x2c   : > { %263 = vst [vmem:[%s2970_s26 + $0xd8] sm:$0xff] %v262_v27  }
  0x2d   : > { %267 = vst [vmem:[%s2970_s26 + $0xe0] sm:$0xff] %v266_v28  }
  0x2e   : > { %271 = vst [vmem:[%s2970_s26 + $0xe8] sm:$0xff] %v270_v29  }
  0x2f   : > { %275 = vst [vmem:[%s2970_s26 + $0xf0] sm:$0xff] %v274_v30  }
  0x30   : > { %279 = vst [vmem:[%s2970_s26 + $0xf8] sm:$0xff] %v278_v31  }
  0x31   : > { %283 = vst [vmem:[%s2970_s26 + $0x100] sm:$0xff] %v282_v32  }
  0x32   : > { %287 = vst [vmem:[%s2970_s26 + $0x108] sm:$0xff] %v286_v33  }
  0x33   : > { %291 = vst [vmem:[%s2970_s26 + $0x110] sm:$0xff] %v290_v34  }
  0x34   : > { %295 = vst [vmem:[%s2970_s26 + $0x118] sm:$0xff] %v294_v35  }
  0x35 PF: > { %p2134_p5 = scmp.ge.s32.totalorder %s2909_s14, 1  ;;  %p464_p6 = scmp.lt.s32.totalorder %s2909_s14, 3 }
  0x37   : > { %p465_p7 = pnand %p2134_p5, %p464_p6 }
  0x38   : > { %s471_s29 = sand.u32 (!%p465_p7), 1, %s2901_s12   ;;  %p494_p8 = scmp.lt.s32.totalorder (!%p465_p7), %s2129_s15, 1 }
  0x39   : > { %468 = sbr.rel (%p465_p7) target bundleno = 387 (0x183), region = 69 }
  0x3a   : > { %s2861_s7 = smul.u32 (!%p465_p7), 288, %s471_s29 }
  0x3c   : > { %s3071_s25 = scalar_lea.vmem (!%p465_p7), [#allocation2], %s2861_s7 }
  0x3e   : > { %v2747_v36 = vld [vmem:[%s3480_s1 + $0x78] sm:$0xff]  ;;  %v2746_v38 = vld [vmem:[%s3480_s1 + $0x70] sm:$0xff]  ;;  %v2745_v42 = vld [vmem:[%s3480_s1 + $0x68] sm:$0xff]  ;;  %vm767_vm0 = vsmask.f32 3328  ;;  %s3489_s15 = smov (!%p494_p8, %s2129_s15), 1 }
  0x3f   : > { %v2755_v37 = vld [vmem:[%s3480_s1 + $0xb8] sm:$0xff]  ;;  %2843 = vmatpush.bf16.msra.mxu1 %v2747_v36  ;;  %621 = vmatpush.bf16.msra.mxu0 %v2747_v36  ;;  %v2754_v39 = vld [vmem:[%s3480_s1 + $0xb0] sm:$0xff]  ;;  %v2753_v43 = vld [vmem:[%s3480_s1 + $0xa8] sm:$0xff]  ;;  %vm768_vm1 = vsmask.f32 7440  ;;  %s2723_s27 = sshll.u32 %s3489_s15, 5 }
  0x40   : > { %963 = vmatpush.bf16.msra.mxu2 %v2755_v37  ;;  %v2767_v40 = vld [vmem:[%s3480_s1 + $0xf8] sm:$0xff]  ;;  %v2766_v41 = vld [vmem:[%s3480_s1 + $0xf0] sm:$0xff]  ;;  %v2765_v44 = vld [vmem:[%s3480_s1 + $0xe8] sm:$0xff]  ;;  %s3448_s14 = scalar_lea.vmem %s3482_s3, %s2723_s27 }
  0x41   : > { %1098 = vmatpush.bf16.msra.mxu3 %v2767_v40  ;;  %v751_v45 = vld [vmem:[%s3071_s25] sm:$0xf]  ;;  %v753_v47 = vld [vmem:[%s3071_s25 + $0x8] sm:$0xf]  ;;  %v752_v52 = vld [vmem:[%s3071_s25 + $0x4] sm:$0x1] }
  0x42   : > { %v2744_v46 = vld [vmem:[%s3480_s1 + $0x60] sm:$0xff]  ;;  %v771_v49 = vshrl.u32 %v751_v45, 16  ;;  %v774_v50 = vshll.u32 %v751_v45, 16  ;;  %v785_v51 = vshrl.u32 %v753_v47, 16  ;;  %v754_v53 = vld [vmem:[%s3071_s25 + $0xc] sm:$0x1]  ;;  %vm3102_vm2 = vmor %vm767_vm0, %vm768_vm1 }
  0x43   : > { %2844 = vmatpush.bf16.msra.mxu1 %v2746_v38  ;;  %622 = vmatpush.bf16.msra.mxu0 %v2746_v38  ;;  %v2752_v48 = vld [vmem:[%s3480_s1 + $0xa0] sm:$0xff]  ;;  %v788_v54 = vshll.u32 %v753_v47, 16  ;;  %v2743_v59 = vld [vmem:[%s3480_s1 + $0x58] sm:$0xff]  ;;  %v780_v63 = vshll.u32 %v752_v52, 16  ;;  %v794_v0 = vshll.u32 %v754_v53, 16  ;;  %v2742_v3 = vld [vmem:[%s3480_s1 + $0x50] sm:$0xff] }
  0x44   : > { %964 = vmatpush.bf16.msra.mxu2 %v2754_v39  ;;  %v2764_v55 = vld [vmem:[%s3480_s1 + $0xe0] sm:$0xff]  ;;  %v773_v56 = vrot.slane %v771_v49, 4  ;;  %v776_v57 = vrot.slane %v774_v50, 5  ;;  %v787_v58 = vrot.slane %v785_v51, 4  ;;  %v2751_v61 = vld [vmem:[%s3480_s1 + $0x98] sm:$0xff]  ;;  %v2750_v4 = vld [vmem:[%s3480_s1 + $0x90] sm:$0xff] }
  0x45   : > { %1099 = vmatpush.bf16.msra.mxu3 %v2766_v41  ;;  %v790_v60 = vrot.slane %v788_v54, 5  ;;  %v2763_v2 = vld [vmem:[%s3480_s1 + $0xd8] sm:$0xff]  ;;  %v782_v6 = vrot.slane %v780_v63, 5  ;;  %v796_v8 = vrot.slane %v794_v0, 5  ;;  %v755_v9 = vld [vmem:[%s3071_s25 + $0x10] sm:$0xf] }
  0x46   : > { %v777_v62 = vor.u32 %v776_v57, %v773_v56  ;;  %v757_v11 = vld [vmem:[%s3071_s25 + $0x18] sm:$0xf]  ;;  %v2762_v12 = vld [vmem:[%s3480_s1 + $0xd0] sm:$0xff]  ;;  %v2741_v13 = vld [vmem:[%s3480_s1 + $0x48] sm:$0xff]  ;;  %v799_v14 = vshrl.u32 %v755_v9, 16  ;;  %v802_v15 = vshll.u32 %v755_v9, 16 }
  0x47   : > { %2845 = vmatpush.bf16.msra.mxu1 %v2745_v42  ;;  %623 = vmatpush.bf16.msra.mxu0 %v2745_v42  ;;  %v791_v1 = vor.u32 %v790_v60, %v787_v58  ;;  %v2749_v16 = vld [vmem:[%s3480_s1 + $0x88] sm:$0xff]  ;;  %v813_v19 = vshrl.u32 %v757_v11, 16  ;;  %v816_v20 = vshll.u32 %v757_v11, 16  ;;  %v2740_v21 = vld [vmem:[%s3480_s1 + $0x40] sm:$0xff]  ;;  %v2738_v23 = vld [vmem:[%s3071_s25 + $0x6c] sm:$0xf0] }
  0x48   : > { %965 = vmatpush.bf16.msra.mxu2 %v2753_v43  ;;  %v778_v5 = vrot.slane %v777_v62, 4  ;;  %v2171_v22 = vld [vmem:[%s3071_s25 + $0x68] sm:$0xf]  ;;  %v2735_v24 = vld [vmem:[%s3480_s1 + $0x38] sm:$0xff]  ;;  %v2748_v26 = vld [vmem:[%s3480_s1 + $0x80] sm:$0xff]  ;;  %v801_v32 = vrot.slane %v799_v14, 4 }
  0x49   : > { %1100 = vmatpush.bf16.msra.mxu3 %v2765_v44  ;;  %v792_v7 = vrot.slane %v791_v1, 4  ;;  %v2761_v25 = vld [vmem:[%s3480_s1 + $0xc8] sm:$0xff]  ;;  %v2736_v28 = vld [vmem:[%s3071_s25 + $0x4c] sm:$0xf0]  ;;  %v756_v31 = vld [vmem:[%s3071_s25 + $0x14] sm:$0x1]  ;;  %v2172_v39 = vor.u32 %v2738_v23, %v2171_v22 }
  0x4a   : > { %v783_v17 = vsel %vm3102_vm2, %v778_v5, %v782_v6  ;;  %v2163_v27 = vld [vmem:[%s3071_s25 + $0x48] sm:$0xf]  ;;  %v804_v33 = vrot.slane %v802_v15, 5  ;;  %v815_v34 = vrot.slane %v813_v19, 4  ;;  %v818_v35 = vrot.slane %v816_v20, 5  ;;  %v2779_v36 = vld [vmem:[%s3480_s1 + $0x138] sm:$0xff] }
  0x4b   : > { %2846 = vmatpush.bf16.msra.mxu1 %v2744_v46  ;;  %624 = vmatpush.bf16.msra.mxu0 %v2744_v46  ;;  %v797_v18 = vsel %vm3102_vm2, %v792_v7, %v796_v8  ;;  %v899_v29 = vunpack.c.l.b16 %v783_v17  ;;  %v2799_v37 = vld [vmem:[%s3480_s1 + $0x1b8] sm:$0xff]  ;;  %v2164_v40 = vor.u32 %v2736_v28, %v2163_v27  ;;  %v2760_v42 = vld [vmem:[%s3480_s1 + $0xc0] sm:$0xff]  ;;  %v2331_v43 = vld [vmem:[%s3071_s25 + $0x90] sm:$0xf]  ;;  %v808_v45 = vshll.u32 %v756_v31, 16 }
  0x4c   : > { %966 = vmatpush.bf16.msra.mxu2 %v2752_v48  ;;  %v900_v30 = vunpack.c.l.b16 %v797_v18  ;;  %v758_v38 = vld [vmem:[%s3071_s25 + $0x1c] sm:$0x1]  ;;  %v2756_v44 = vld [vmem:[%s3071_s25 + $0x94] sm:$0xf0]  ;;  %v2734_v46 = vld [vmem:[%s3480_s1 + $0x30] sm:$0xff]  ;;  %v805_v47 = vor.u32 %v804_v33, %v801_v32  ;;  %v819_v48 = vor.u32 %v818_v35, %v815_v34 }
  0x4d   : > { %1101 = vmatpush.bf16.msra.mxu3 %v2764_v55  ;;  %v822_v49 = vshll.u32 %v758_v38, 16  ;;  %v2811_v50 = vld [vmem:[%s3480_s1 + $0x1f8] sm:$0xff]  ;;  %v2778_v51 = vld [vmem:[%s3480_s1 + $0x130] sm:$0xff]  ;;  %v2332_v53 = vor.u32 %v2756_v44, %v2331_v43  ;;  %v2733_v54 = vld [vmem:[%s3480_s1 + $0x28] sm:$0xff]  ;;  %v810_v55 = vrot.slane %v808_v45, 5 }
  0x4e   : > { %v907_v41 = vpack.c.b16 %v900_v30, %v899_v29  ;;  %v2798_v52 = vld [vmem:[%s3480_s1 + $0x1b0] sm:$0xff]  ;;  %v806_v56 = vrot.slane %v805_v47, 4  ;;  %v820_v57 = vrot.slane %v819_v48, 4  ;;  %v759_v60 = vld [vmem:[%s3071_s25 + $0x20] sm:$0xf]  ;;  %v2797_v62 = vld [vmem:[%s3480_s1 + $0x1a8] sm:$0xff] }
  0x4f   : > { %2847 = vmatpush.bf16.msra.mxu1 %v2743_v59  ;;  %625 = vmatpush.bf16.msra.mxu0 %v2743_v59  ;;  %v824_v58 = vrot.slane %v822_v49, 5  ;;  %v2810_v59 = vld [vmem:[%s3480_s1 + $0x1f0] sm:$0xff]  ;;  %v761_v63 = vld [vmem:[%s3071_s25 + $0x28] sm:$0xf]  ;;  %v827_v0 = vshrl.u32 %v759_v60, 16  ;;  %v830_v1 = vshll.u32 %v759_v60, 16 }
  0x50   : > { %967 = vmatpush.bf16.msra.mxu2 %v2751_v61  ;;  %v2777_v61 = vld [vmem:[%s3480_s1 + $0x128] sm:$0xff]  ;;  %v841_v5 = vshrl.u32 %v761_v63, 16  ;;  %v844_v6 = vshll.u32 %v761_v63, 16  ;;  %v2776_v8 = vld [vmem:[%s3480_s1 + $0x120] sm:$0xff]  ;;  %v2175_v11 = vld [vmem:[%s3071_s25 + $0x78] sm:$0xf] }
  0x51   : > { %1102 = vmatpush.bf16.msra.mxu3 %v2763_v2  ;;  %v2732_v2 = vld [vmem:[%s3480_s1 + $0x20] sm:$0xff]  ;;  %v2809_v7 = vld [vmem:[%s3480_s1 + $0x1e8] sm:$0xff]  ;;  %v829_v17 = vrot.slane %v827_v0, 4  ;;  %v832_v18 = vrot.slane %v830_v1, 5  ;;  %v2731_v19 = vld [vmem:[%s3480_s1 + $0x18] sm:$0xff] }
  0x52   : > { %v2796_v9 = vld [vmem:[%s3480_s1 + $0x1a0] sm:$0xff]  ;;  %v843_v20 = vrot.slane %v841_v5, 4  ;;  %v2775_v22 = vld [vmem:[%s3480_s1 + $0x118] sm:$0xff]  ;;  %v2757_v29 = vld [vmem:[%s3071_s25 + $0xa4] sm:$0xf0] }
  0x53   : > { %2848 = vmatpush.bf16.msra.mxu1 %v2742_v3  ;;  %626 = vmatpush.bf16.msra.mxu0 %v2742_v3  ;;  %v811_v3 = vsel %vm3102_vm2, %v806_v56, %v810_v55  ;;  %v2737_v14 = vld [vmem:[%s3071_s25 + $0x5c] sm:$0xf0]  ;;  %v760_v23 = vld [vmem:[%s3071_s25 + $0x24] sm:$0x1]  ;;  %v833_v30 = vor.u32 %v832_v18, %v829_v17  ;;  %v2730_v31 = vld [vmem:[%s3480_s1 + $0x10] sm:$0xff] }
  0x54   : > { %968 = vmatpush.bf16.msra.mxu2 %v2750_v4  ;;  %v825_v4 = vsel %vm3102_vm2, %v820_v57, %v824_v58  ;;  %v901_v15 = vunpack.c.l.b16 %v811_v3  ;;  %v2335_v28 = vld [vmem:[%s3071_s25 + $0xa0] sm:$0xf]  ;;  %v836_v32 = vshll.u32 %v760_v23, 16  ;;  %v2774_v35 = vld [vmem:[%s3480_s1 + $0x110] sm:$0xff]  ;;  %v2729_v38 = vld [vmem:[%s3480_s1 + $0x8] sm:$0xff] }
  0x55   : > { %1103 = vmatpush.bf16.msra.mxu3 %v2762_v12  ;;  %v2739_v12 = vld [vmem:[%s3071_s25 + $0x7c] sm:$0xf0]  ;;  %v763_v44 = vld [vmem:[%s3071_s25 + $0x30] sm:$0xf]  ;;  %v2773_v45 = vld [vmem:[%s3480_s1 + $0x108] sm:$0xff] }
  0x56   : > { %v2808_v43 = vld [vmem:[%s3480_s1 + $0x1e0] sm:$0xff]  ;;  %v2794_v47 = vld [vmem:[%s3480_s1 + $0x190] sm:$0xff]  ;;  %v855_v48 = vshrl.u32 %v763_v44, 16  ;;  %v858_v49 = vshll.u32 %v763_v44, 16  ;;  %v2787_v56 = vld [vmem:[%s3480_s1 + $0x178] sm:$0xff] }
  0x57   : > { %2849 = vmatpush.bf16.msra.mxu1 %v2741_v13  ;;  %627 = vmatpush.bf16.msra.mxu0 %v2741_v13  ;;  %v2167_v13 = vld [vmem:[%s3071_s25 + $0x58] sm:$0xf]  ;;  %v2772_v57 = vld [vmem:[%s3480_s1 + $0x100] sm:$0xff]  ;;  %v2786_v5 = vld [vmem:[%s3480_s1 + $0x170] sm:$0xff] }
  0x58   : > { %969 = vmatpush.bf16.msra.mxu2 %v2749_v16  ;;  %v902_v16 = vunpack.c.l.b16 %v825_v4  ;;  %v2211_v58 = vld [vmem:[%s3071_s25] sm:$0xf]  ;;  %v2819_v60 = vld [vmem:[%s3480_s1 + $0x238] sm:$0xff]  ;;  %v857_v1 = vrot.slane %v855_v48, 4  ;;  %v2781_v48 = vld [vmem:[%s3480_s1 + $0x148] sm:$0xff] }
  0x59   : > { %1104 = vmatpush.bf16.msra.mxu3 %v2761_v25  ;;  %v2176_v25 = vor.u32 %v2739_v12, %v2175_v11  ;;  %v2339_v12 = vld [vmem:[%s3071_s25 + $0xb0] sm:$0xf] }
  0x5a   : > { %v908_v27 = vpack.c.b16 %v902_v16, %v901_v15  ;;  %v2818_v15 = vld [vmem:[%s3480_s1 + $0x230] sm:$0xff] }
  0x5b   : > { %2850 = vmatpush.bf16.msra.mxu1 %v2740_v21  ;;  %628 = vmatpush.bf16.msra.mxu0 %v2740_v21  ;;  %v846_v21 = vrot.slane %v844_v6, 5  ;;  %v764_v6 = vld [vmem:[%s3071_s25 + $0x34] sm:$0x1] }
  0x5c   : > { %970 = vmatpush.bf16.msra.mxu2 %v2748_v26  ;;  %v2168_v26 = vor.u32 %v2737_v14, %v2167_v13  ;;  %v2758_v13 = vld [vmem:[%s3071_s25 + $0xb4] sm:$0xf0]  ;;  %v864_v16 = vshll.u32 %v764_v6, 16  ;;  %v2659_v6 = vld [vmem:[%s3071_s25 + $0x10] sm:$0xf] }
  0x5d   : > { %1105 = vmatpush.bf16.msra.mxu3 %v2760_v42  ;;  %v847_v33 = vor.u32 %v846_v21, %v843_v20  ;;  %v2793_v20 = vld [vmem:[%s3480_s1 + $0x188] sm:$0xff]  ;;  %v2340_v21 = vor.u32 %v2758_v13, %v2339_v12 }
  0x5e   : > { %639 = vmatmul.bf16.vlgmr.msra.gmra.mxu1 %v2172_v39  ;;  %629 = vmatmul.bf16.vlgmr.msra.gmra.mxu0 %v2164_v40  ;;  %v834_v39 = vrot.slane %v833_v30, 4  ;;  %v838_v40 = vrot.slane %v836_v32, 5  ;;  %v866_v23 = vrot.slane %v864_v16, 5  ;;  %v2805_v30 = vld [vmem:[%s3480_s1 + $0x1c8] sm:$0xff]  ;;  %v2223_v16 = vld [vmem:[%s3071_s25 + $0x30] sm:$0xf] }
  0x5f   : > { %722 = vmatpush.bf16.msrb.mxu1 %v2735_v24  ;;  %1233 = vmatpush.bf16.msrb.mxu0 %v2779_v36  ;;  %v762_v24 = vld [vmem:[%s3071_s25 + $0x2c] sm:$0x1]  ;;  %v2336_v36 = vor.u32 %v2757_v29, %v2335_v28  ;;  %v2784_v29 = vld [vmem:[%s3480_s1 + $0x160] sm:$0xff] }
  0x60   : > { %1614 = vmatpush.bf16.msrb.mxu2 %v2799_v37  ;;  %1106 = vmatmul.bf16.vlgmr.msra.gmra.mxu3 %v2332_v53  ;;  %v850_v34 = vshll.u32 %v762_v24, 16  ;;  %v2795_v37 = vld [vmem:[%s3480_s1 + $0x198] sm:$0xff]  ;;  %v2817_v28 = vld [vmem:[%s3480_s1 + $0x228] sm:$0xff] }
  0x61   : > { %971 = vmatmul.bf16.vlgmr.msra.gmra.mxu2 %v907_v41  ;;  %1749 = vmatpush.bf16.msrb.mxu3 %v2811_v50  ;;  %v848_v41 = vrot.slane %v847_v33, 4  ;;  %v2807_v50 = vld [vmem:[%s3480_s1 + $0x1d8] sm:$0xff] }
  0x62   : > { %v852_v42 = vrot.slane %v850_v34, 5  ;;  %v2783_v34 = vld [vmem:[%s3480_s1 + $0x158] sm:$0xff] }
  0x63   : > { %723 = vmatpush.bf16.msrb.mxu1 %v2734_v46  ;;  %1234 = vmatpush.bf16.msrb.mxu0 %v2778_v51  ;;  %v765_v46 = vld [vmem:[%s3071_s25 + $0x38] sm:$0xf]  ;;  %v2728_v51 = vld [vmem:[%s3480_s1] sm:$0xff] }
  0x64   : > { %1615 = vmatpush.bf16.msrb.mxu2 %v2798_v52  ;;  %v839_v52 = vsel %vm3102_vm2, %v834_v39, %v838_v40  ;;  %v853_v53 = vsel %vm3102_vm2, %v848_v41, %v852_v42  ;;  %v872_v55 = vshll.u32 %v765_v46, 16  ;;  %v2782_v41 = vld [vmem:[%s3480_s1 + $0x150] sm:$0xff] }
  0x65   : > { %1750 = vmatpush.bf16.msrb.mxu3 %v2810_v59  ;;  %v2724_v59 = vld [vmem:[%s3071_s25 + $0x4] sm:$0xf0]  ;;  %v903_v63 = vunpack.c.l.b16 %v839_v52  ;;  %v904_v0 = vunpack.c.l.b16 %v853_v53  ;;  %v2814_v52 = vld [vmem:[%s3480_s1 + $0x210] sm:$0xff]  ;;  %v2219_v53 = vld [vmem:[%s3071_s25 + $0x20] sm:$0xf] }
  0x66   : > { %v874_v4 = vrot.slane %v872_v55, 5  ;;  %v2726_v55 = vld [vmem:[%s3071_s25 + $0x24] sm:$0xf0] }
  0x67   : > { %724 = vmatpush.bf16.msrb.mxu1 %v2733_v54  ;;  %1235 = vmatpush.bf16.msrb.mxu0 %v2777_v61  ;;  %v869_v54 = vshrl.u32 %v765_v46, 16  ;;  %v2403_v61 = vld [vmem:[%s3071_s25 + $0xd8] sm:$0xf]  ;;  %v909_v11 = vpack.c.b16 %v904_v0, %v903_v63  ;;  %v2759_v46 = vld [vmem:[%s3071_s25 + $0xc4] sm:$0xf0] }
  0x68   : > { %1616 = vmatpush.bf16.msrb.mxu2 %v2797_v62  ;;  %v2768_v62 = vld [vmem:[%s3071_s25 + $0xdc] sm:$0xf0]  ;;  %v2611_v63 = vld [vmem:[%s3071_s25 + $0x50] sm:$0xf]  ;;  %v2800_v0 = vld [vmem:[%s3071_s25 + $0x54] sm:$0xf0] }
  0x69   : > { %1751 = vmatpush.bf16.msrb.mxu3 %v2809_v7  ;;  %v871_v3 = vrot.slane %v869_v54, 4  ;;  %v766_v7 = vld [vmem:[%s3071_s25 + $0x3c] sm:$0x1]  ;;  %v2813_v54 = vld [vmem:[%s3480_s1 + $0x208] sm:$0xff] }
  0x6a   : > { %v878_v18 = vshll.u32 %v766_v7, 16 }
  0x6b   : > { %725 = vmatpush.bf16.msrb.mxu1 %v2732_v2  ;;  %1236 = vmatpush.bf16.msrb.mxu0 %v2776_v8  ;;  %v860_v2 = vrot.slane %v858_v49, 5  ;;  %v2212_v8 = vor.u32 %v2724_v59, %v2211_v58  ;;  %v875_v17 = vor.u32 %v874_v4, %v871_v3  ;;  %v2804_v49 = vld [vmem:[%s3480_s1 + $0x1c0] sm:$0xff]  ;;  %v2539_v58 = vld [vmem:[%s3071_s25 + $0x8] sm:$0xf]  ;;  %v2788_v59 = vld [vmem:[%s3071_s25 + $0xc] sm:$0xf0] }
  0x6c   : > { %1617 = vmatpush.bf16.msrb.mxu2 %v2796_v9  ;;  %v2404_v9 = vor.u32 %v2768_v62, %v2403_v61  ;;  %v2540_v62 = vor.u32 %v2788_v59, %v2539_v58  ;;  %v2449_v3 = vld [vmem:[%s3071_s25 + $0x90] sm:$0xf]  ;;  %v2451_v4 = vld [vmem:[%s3071_s25 + $0x98] sm:$0xf] }
  0x6d   : > { %1752 = vmatpush.bf16.msrb.mxu3 %v2808_v43  ;;  %v861_v14 = vor.u32 %v860_v2, %v857_v1  ;;  %v876_v24 = vrot.slane %v875_v17, 4  ;;  %v2612_v1 = vor.u32 %v2800_v0, %v2611_v63  ;;  %v2812_v2 = vld [vmem:[%s3480_s1 + $0x200] sm:$0xff]  ;;  %v1287_v7 = vshrl.u32 %v2449_v3, 16  ;;  %v2727_v17 = vld [vmem:[%s3071_s25 + $0x34] sm:$0xf0] }
  0x6e   : > { %644 = vmatmul.bf16.gmra.mxu1 %v2176_v25  ;;  %634 = vmatmul.bf16.gmra.mxu0 %v2168_v26  ;;  %v880_v25 = vrot.slane %v878_v18, 5  ;;  %v2792_v26 = vld [vmem:[%s3480_s1 + $0x180] sm:$0xff]  ;;  %v2415_v18 = vld [vmem:[%s3071_s25 + $0x108] sm:$0xf] }
  0x6f   : > { %726 = vmatpush.bf16.msrb.mxu1 %v2731_v19  ;;  %1237 = vmatpush.bf16.msrb.mxu0 %v2775_v22  ;;  %v2785_v19 = vld [vmem:[%s3480_s1 + $0x168] sm:$0xff]  ;;  %v862_v22 = vrot.slane %v861_v14, 4  ;;  %v1817_v14 = vshrl.u32 %v2659_v6, 16 }
  0x70   : > { %1618 = vmatpush.bf16.msrb.mxu2 %v2795_v37  ;;  %1111 = vmatmul.bf16.gmra.mxu3 %v2336_v36  ;;  %v881_v33 = vsel %vm3102_vm2, %v876_v24, %v880_v25  ;;  %v2725_v36 = vld [vmem:[%s3071_s25 + $0x14] sm:$0xf0]  ;;  %v2407_v37 = vld [vmem:[%s3071_s25 + $0xe8] sm:$0xf] }
  0x71   : > { %976 = vmatmul.bf16.gmra.mxu2 %v908_v27  ;;  %1753 = vmatpush.bf16.msrb.mxu3 %v2807_v50  ;;  %v2806_v27 = vld [vmem:[%s3480_s1 + $0x1d0] sm:$0xff]  ;;  %v867_v32 = vsel %vm3102_vm2, %v862_v22, %v866_v23  ;;  %v906_v40 = vunpack.c.l.b16 %v881_v33  ;;  %v2815_v50 = vld [vmem:[%s3480_s1 + $0x218] sm:$0xff]  ;;  %v1289_v23 = vrot.slane %v1287_v7, 4 }
  0x72   : > { %v905_v39 = vunpack.c.l.b16 %v867_v32  ;;  %v2452_v22 = vld [vmem:[%s3071_s25 + $0x9c] sm:$0x1]  ;;  %v2658_v32 = vld [vmem:[%s3071_s25 + $0xc] sm:$0x1]  ;;  %v2660_v33 = vld [vmem:[%s3071_s25 + $0x14] sm:$0x1] }
  0x73   : > { %727 = vmatpush.bf16.msrb.mxu1 %v2730_v31  ;;  %1238 = vmatpush.bf16.msrb.mxu0 %v2774_v35  ;;  %v2816_v31 = vld [vmem:[%s3480_s1 + $0x220] sm:$0xff]  ;;  %v2215_v35 = vld [vmem:[%s3071_s25 + $0x10] sm:$0xf] }
  0x74   : > { %1619 = vmatpush.bf16.msrb.mxu2 %v2794_v47  ;;  %v2216_v42 = vor.u32 %v2725_v36, %v2215_v35  ;;  %v910_v44 = vpack.c.b16 %v906_v40, %v905_v39  ;;  %v1310_v36 = vshll.u32 %v2452_v22, 16 }
  0x75   : > { %1754 = vmatpush.bf16.msrb.mxu3 %v2806_v27  ;;  %v2789_v27 = vld [vmem:[%s3071_s25 + $0x1c] sm:$0xf0] }
  0x77   : > { %728 = vmatpush.bf16.msrb.mxu1 %v2729_v38  ;;  %1239 = vmatpush.bf16.msrb.mxu0 %v2773_v45  ;;  %v2769_v38 = vld [vmem:[%s3071_s25 + $0xec] sm:$0xf0]  ;;  %v2343_v45 = vld [vmem:[%s3071_s25 + $0xc0] sm:$0xf] }
  0x78   : > { %1620 = vmatpush.bf16.msrb.mxu2 %v2793_v20  ;;  %v2408_v43 = vor.u32 %v2769_v38, %v2407_v37  ;;  %v2344_v47 = vor.u32 %v2759_v46, %v2343_v45  ;;  %v2543_v20 = vld [vmem:[%s3071_s25 + $0x18] sm:$0xf]  ;;  %v1826_v46 = vshll.u32 %v2660_v33, 16 }
  0x79   : > { %1755 = vmatpush.bf16.msrb.mxu3 %v2805_v30  ;;  %v1819_v30 = vrot.slane %v1817_v14, 4  ;;  %v2544_v38 = vor.u32 %v2789_v27, %v2543_v20  ;;  %v2456_v14 = vld [vmem:[%s3071_s25 + $0xac] sm:$0x1] }
  0x7a   : > { %v1828_v59 = vrot.slane %v1826_v46, 5 }
  0x7b   : > { %729 = vmatpush.bf16.msrb.mxu1 %v2728_v51  ;;  %1240 = vmatpush.bf16.msrb.mxu0 %v2772_v57  ;;  %v2780_v51 = vld [vmem:[%s3480_s1 + $0x140] sm:$0xff] }
  0x7c   : > { %1621 = vmatpush.bf16.msrb.mxu2 %v2792_v26  ;;  %v2770_v57 = vld [vmem:[%s3071_s25 + $0xfc] sm:$0xf0] }
  0x7d   : > { %1756 = vmatpush.bf16.msrb.mxu3 %v2804_v49  ;;  %v2453_v49 = vld [vmem:[%s3071_s25 + $0xa0] sm:$0xf] }
  0x7e   : > { %730 = vmatmul.bf16.vlgmr.msrb.gmra.mxu1 %v2212_v8  ;;  %1241 = vmatmul.bf16.vlgmr.msrb.gmra.mxu0 %v2404_v9  ;;  %v1290_v8 = vshll.u32 %v2449_v3, 16  ;;  %v1301_v9 = vshrl.u32 %v2451_v4, 16 }
  0x7f   : > { %1479 = vmatpush.bf16.msra.mxu1 %v2787_v56  ;;  %1995 = vmatpush.bf16.msra.mxu0 %v2819_v60  ;;  %v2411_v56 = vld [vmem:[%s3071_s25 + $0xf8] sm:$0xf] }
  0x80   : > { %1116 = vmatmul.bf16.gmra.mxu3 %v2340_v21  ;;  %2851 = vmatpush.bf16.msra.mxu2 %v2819_v60  ;;  %v2220_v60 = vor.u32 %v2726_v55, %v2219_v53  ;;  %v2412_v61 = vor.u32 %v2770_v57, %v2411_v56  ;;  %v2450_v21 = vld [vmem:[%s3071_s25 + $0x94] sm:$0x1]  ;;  %v1292_v24 = vrot.slane %v1290_v8, 5  ;;  %v1303_v25 = vrot.slane %v1301_v9, 4  ;;  %v2663_v55 = vld [vmem:[%s3071_s25 + $0x20] sm:$0xf] }
  0x81   : > { %981 = vmatmul.bf16.gmra.mxu2 %v909_v11  ;;  %v1304_v11 = vshll.u32 %v2451_v4, 16  ;;  %v1296_v35 = vshll.u32 %v2450_v21, 16  ;;  %v1848_v3 = vshll.u32 %v2663_v55, 16  ;;  %v2454_v8 = vld [vmem:[%s3071_s25 + $0xa4] sm:$0x1] }
  0x82   : > { %v1293_v39 = vor.u32 %v1292_v24, %v1289_v23  ;;  %v2662_v23 = vld [vmem:[%s3071_s25 + $0x1c] sm:$0x1]  ;;  %v2664_v24 = vld [vmem:[%s3071_s25 + $0x24] sm:$0x1] }
  0x83   : > { %1480 = vmatpush.bf16.msra.mxu1 %v2786_v5  ;;  %1996 = vmatpush.bf16.msra.mxu0 %v2818_v15  ;;  %v2657_v5 = vld [vmem:[%s3071_s25 + $0x8] sm:$0xf]  ;;  %v1306_v26 = vrot.slane %v1304_v11, 5 }
  0x84   : > { %2852 = vmatpush.bf16.msra.mxu2 %v2818_v15  ;;  %v1803_v12 = vshrl.u32 %v2657_v5, 16  ;;  %v1806_v13 = vshll.u32 %v2657_v5, 16  ;;  %v1820_v15 = vshll.u32 %v2659_v6, 16 }
  0x85   : > { %v1307_v40 = vor.u32 %v1306_v26, %v1303_v25  ;;  %v2547_v25 = vld [vmem:[%s3071_s25 + $0x28] sm:$0xf]  ;;  %v2790_v26 = vld [vmem:[%s3071_s25 + $0x2c] sm:$0xf0] }
  0x87   : > { %1481 = vmatpush.bf16.msra.mxu1 %v2785_v19  ;;  %1997 = vmatpush.bf16.msra.mxu0 %v2817_v28  ;;  %v2771_v19 = vld [vmem:[%s3071_s25 + $0x10c] sm:$0xf0] }
  0x88   : > { %2853 = vmatpush.bf16.msra.mxu2 %v2817_v28  ;;  %v1805_v28 = vrot.slane %v1803_v12, 4  ;;  %v2416_v37 = vor.u32 %v2771_v19, %v2415_v18  ;;  %v1850_v18 = vrot.slane %v1848_v3, 5 }
  0x8b   : > { %1482 = vmatpush.bf16.msra.mxu1 %v2784_v29  ;;  %1998 = vmatpush.bf16.msra.mxu0 %v2816_v31  ;;  %v1808_v29 = vrot.slane %v1806_v13, 5 }
  0x8c   : > { %2854 = vmatpush.bf16.msra.mxu2 %v2816_v31  ;;  %v1822_v31 = vrot.slane %v1820_v15, 5 }
  0x8e   : > { %735 = vmatmul.bf16.gmra.mxu1 %v2216_v42  ;;  %1246 = vmatmul.bf16.gmra.mxu0 %v2408_v43  ;;  %v2801_v42 = vld [vmem:[%s3071_s25 + $0x64] sm:$0xf0]  ;;  %v1809_v43 = vor.u32 %v1808_v29, %v1805_v28  ;;  %v1823_v45 = vor.u32 %v1822_v31, %v1819_v30  ;;  %v1324_v28 = vshll.u32 %v2454_v8, 16  ;;  %v1338_v30 = vshll.u32 %v2456_v14, 16  ;;  %v2458_v14 = vld [vmem:[%s3071_s25 + $0xb4] sm:$0x1] }
  0x8f   : > { %1483 = vmatpush.bf16.msra.mxu1 %v2783_v34  ;;  %1999 = vmatpush.bf16.msra.mxu0 %v2815_v50  ;;  %v2224_v34 = vor.u32 %v2727_v17, %v2223_v16 }
  0x90   : > { %1121 = vmatmul.bf16.gmra.mxu3 %v2344_v47  ;;  %2855 = vmatpush.bf16.msra.mxu2 %v2815_v50  ;;  %v1298_v47 = vrot.slane %v1296_v35, 5  ;;  %v2455_v50 = vld [vmem:[%s3071_s25 + $0xa8] sm:$0xf]  ;;  %v1810_v56 = vrot.slane %v1809_v43, 4  ;;  %v1824_v58 = vrot.slane %v1823_v45, 4  ;;  %v1340_v43 = vrot.slane %v1338_v30, 5 }
  0x91   : > { %986 = vmatmul.bf16.gmra.mxu2 %v910_v44  ;;  %v1812_v44 = vshll.u32 %v2658_v32, 16  ;;  %v1332_v63 = vshll.u32 %v2455_v50, 16  ;;  %v1840_v32 = vshll.u32 %v2662_v23, 16  ;;  %v2551_v23 = vld [vmem:[%s3071_s25 + $0x38] sm:$0xf] }
  0x92   : > { %v1829_v7 = vsel %vm3102_vm2, %v1824_v58, %v1828_v59  ;;  %v2670_v30 = vld [vmem:[%s3071_s25 + $0x3c] sm:$0x1] }
  0x93   : > { %1484 = vmatpush.bf16.msra.mxu1 %v2782_v41  ;;  %2000 = vmatpush.bf16.msra.mxu0 %v2814_v52  ;;  %v2615_v41 = vld [vmem:[%s3071_s25 + $0x60] sm:$0xf]  ;;  %v1814_v57 = vrot.slane %v1812_v44, 5  ;;  %v1334_v13 = vrot.slane %v1332_v63, 5  ;;  %v1932_v22 = vunpack.c.l.b16 %v1829_v7  ;;  %v1842_v45 = vrot.slane %v1840_v32, 5 }
  0x94   : > { %2856 = vmatpush.bf16.msra.mxu2 %v2814_v52  ;;  %v1308_v52 = vrot.slane %v1307_v40, 4  ;;  %v2616_v53 = vor.u32 %v2801_v42, %v2615_v41  ;;  %v1326_v41 = vrot.slane %v1324_v28, 5  ;;  %v2791_v28 = vld [vmem:[%s3071_s25 + $0x3c] sm:$0xf0] }
  0x95   : > { %v1815_v6 = vsel %vm3102_vm2, %v1810_v56, %v1814_v57  ;;  %v2669_v57 = vld [vmem:[%s3071_s25 + $0x38] sm:$0xf] }
  0x96   : > { %v1931_v21 = vunpack.c.l.b16 %v1815_v6  ;;  %v1890_v6 = vshll.u32 %v2669_v57, 16 }
  0x97   : > { %1485 = vmatpush.bf16.msra.mxu1 %v2781_v48  ;;  %2001 = vmatpush.bf16.msra.mxu0 %v2813_v54  ;;  %v1312_v48 = vrot.slane %v1310_v36, 5 }
  0x98   : > { %2857 = vmatpush.bf16.msra.mxu2 %v2813_v54  ;;  %v2661_v54 = vld [vmem:[%s3071_s25 + $0x18] sm:$0xf]  ;;  %v1939_v36 = vpack.c.b16 %v1932_v22, %v1931_v21 }
  0x99   : > { %v1831_v0 = vshrl.u32 %v2661_v54, 16  ;;  %v1313_v5 = vsel %vm3102_vm2, %v1308_v52, %v1312_v48  ;;  %v2457_v48 = vld [vmem:[%s3071_s25 + $0xb0] sm:$0xf] }
  0x9a   : > { %v1416_v20 = vunpack.c.l.b16 %v1313_v5  ;;  %v2667_v52 = vld [vmem:[%s3071_s25 + $0x30] sm:$0xf]  ;;  %v1346_v56 = vshll.u32 %v2457_v48, 16  ;;  %v1887_v5 = vshrl.u32 %v2669_v57, 16 }
  0x9b   : > { %1486 = vmatpush.bf16.msra.mxu1 %v2780_v51  ;;  %2002 = vmatpush.bf16.msra.mxu0 %v2812_v2  ;;  %v1294_v51 = vrot.slane %v1293_v39, 4  ;;  %v1833_v15 = vrot.slane %v1831_v0, 4  ;;  %v2802_v39 = vld [vmem:[%s3071_s25 + $0x74] sm:$0xf0] }
  0x9c   : > { %2858 = vmatpush.bf16.msra.mxu2 %v2812_v2  ;;  %v1845_v2 = vshrl.u32 %v2663_v55, 16  ;;  %v1343_v55 = vshrl.u32 %v2457_v48, 16  ;;  %v1348_v8 = vrot.slane %v1346_v56, 5 }
  0x9d   : > { %v1299_v4 = vsel %vm3102_vm2, %v1294_v51, %v1298_v47  ;;  %v2665_v51 = vld [vmem:[%s3071_s25 + $0x28] sm:$0xf] }
  0x9e   : > { %740 = vmatmul.bf16.gmra.mxu1 %v2220_v60  ;;  %1251 = vmatmul.bf16.gmra.mxu0 %v2412_v61  ;;  %v1315_v60 = vshrl.u32 %v2453_v49, 16  ;;  %v1318_v61 = vshll.u32 %v2453_v49, 16  ;;  %v1847_v17 = vrot.slane %v1845_v2, 4  ;;  %v1415_v19 = vunpack.c.l.b16 %v1299_v4 }
  0x9f   : > { %v1859_v63 = vshrl.u32 %v2665_v51, 16  ;;  %v1862_v0 = vshll.u32 %v2665_v51, 16  ;;  %v1876_v2 = vshll.u32 %v2667_v52, 16  ;;  %v1345_v7 = vrot.slane %v1343_v55, 4 }
  0xa0   : > { %1757 = vmatmul.bf16.vlgmr.msrb.gmra.mxu3 %v2612_v1  ;;  %v1834_v1 = vshll.u32 %v2661_v54, 16  ;;  %v1317_v9 = vrot.slane %v1315_v60, 4  ;;  %v1320_v11 = vrot.slane %v1318_v61, 5  ;;  %v1851_v33 = vor.u32 %v1850_v18, %v1847_v17  ;;  %v2666_v18 = vld [vmem:[%s3071_s25 + $0x2c] sm:$0x1] }
  0xa1   : > { %1622 = vmatmul.bf16.vlgmr.msrb.gmra.mxu2 %v2540_v62  ;;  %v1329_v62 = vshrl.u32 %v2455_v50, 16  ;;  %v1423_v35 = vpack.c.b16 %v1416_v20, %v1415_v19  ;;  %v2459_v50 = vld [vmem:[%s3071_s25 + $0xb8] sm:$0xf]  ;;  %v1861_v19 = vrot.slane %v1859_v63, 4  ;;  %v1864_v20 = vrot.slane %v1862_v0, 5 }
  0xa2   : > { %v1836_v16 = vrot.slane %v1834_v1, 5  ;;  %v1321_v27 = vor.u32 %v1320_v11, %v1317_v9  ;;  %v1852_v46 = vrot.slane %v1851_v33, 4  ;;  %v1357_v60 = vshrl.u32 %v2459_v50, 16  ;;  %v2463_v63 = vld [vmem:[%s3071_s25 + $0xc8] sm:$0xf] }
  0xa3   : > { %v1331_v12 = vrot.slane %v1329_v62, 4  ;;  %v1360_v61 = vshll.u32 %v2459_v50, 16  ;;  %v2671_v62 = vld [vmem:[%s3071_s25 + $0x40] sm:$0xf]  ;;  %v1873_v1 = vshrl.u32 %v2667_v52, 16  ;;  %v1878_v22 = vrot.slane %v1876_v2, 5 }
  0xa4   : > { %v1837_v31 = vor.u32 %v1836_v16, %v1833_v15  ;;  %v1322_v40 = vrot.slane %v1321_v27, 4  ;;  %v1901_v9 = vshrl.u32 %v2671_v62, 16  ;;  %v1904_v11 = vshll.u32 %v2671_v62, 16  ;;  %v2460_v15 = vld [vmem:[%s3071_s25 + $0xbc] sm:$0x1] }
  0xa5   : > { %v1335_v29 = vor.u32 %v1334_v13, %v1331_v12  ;;  %v1359_v16 = vrot.slane %v1357_v60, 4  ;;  %v1362_v17 = vrot.slane %v1360_v61, 5  ;;  %v1875_v21 = vrot.slane %v1873_v1, 4  ;;  %v2461_v60 = vld [vmem:[%s3071_s25 + $0xc0] sm:$0xf] }
  0xa6   : > { %v1838_v44 = vrot.slane %v1837_v31, 4  ;;  %v1903_v31 = vrot.slane %v1901_v9, 4  ;;  %v1906_v32 = vrot.slane %v1904_v11, 5  ;;  %v1352_v33 = vshll.u32 %v2458_v14, 16 }
  0xa7   : > { %v1336_v42 = vrot.slane %v1335_v29, 4  ;;  %v1349_v29 = vor.u32 %v1348_v8, %v1345_v7  ;;  %v1385_v7 = vshrl.u32 %v2463_v63, 16  ;;  %v1388_v8 = vshll.u32 %v2463_v63, 16 }
  0xa8   : > { %v1843_v58 = vsel %vm3102_vm2, %v1838_v44, %v1842_v45  ;;  %v2803_v44 = vld [vmem:[%s3071_s25 + $0x84] sm:$0xf0]  ;;  %v1907_v48 = vor.u32 %v1906_v32, %v1903_v31  ;;  %v1354_v50 = vrot.slane %v1352_v33, 5 }
  0xa9   : > { %v1341_v54 = vsel %vm3102_vm2, %v1336_v42, %v1340_v43  ;;  %v1933_v12 = vunpack.c.l.b16 %v1843_v58  ;;  %v2552_v42 = vor.u32 %v2791_v28, %v2551_v23  ;;  %v2623_v43 = vld [vmem:[%s3071_s25 + $0x80] sm:$0xf] }
  0xaa   : > { %v1418_v4 = vunpack.c.l.b16 %v1341_v54  ;;  %v2624_v54 = vor.u32 %v2803_v44, %v2623_v43  ;;  %v1908_v61 = vrot.slane %v1907_v48, 4 }
  0xae   : > { %745 = vmatmul.bf16.gmra.mxu1 %v2224_v34  ;;  %1256 = vmatmul.bf16.gmra.mxu0 %v2416_v37  ;;  %v1854_v34 = vshll.u32 %v2664_v24, 16  ;;  %v2548_v37 = vor.u32 %v2790_v26, %v2547_v25  ;;  %v2668_v24 = vld [vmem:[%s3071_s25 + $0x34] sm:$0x1]  ;;  %v1889_v25 = vrot.slane %v1887_v5, 4  ;;  %v1892_v26 = vrot.slane %v1890_v6, 5 }
  0xaf   : > { %v1374_v6 = vshll.u32 %v2461_v60, 16 }
  0xb0   : > { %1762 = vmatmul.bf16.gmra.mxu3 %v2616_v53  ;;  %v1856_v47 = vrot.slane %v1854_v34, 5  ;;  %v1327_v53 = vsel %vm3102_vm2, %v1322_v40, %v1326_v41  ;;  %v1363_v34 = vor.u32 %v1362_v17, %v1359_v16  ;;  %v1879_v40 = vor.u32 %v1878_v22, %v1875_v21  ;;  %v2464_v22 = vld [vmem:[%s3071_s25 + $0xcc] sm:$0x1] }
  0xb1   : > { %1627 = vmatmul.bf16.gmra.mxu2 %v2544_v38  ;;  %v2619_v38 = vld [vmem:[%s3071_s25 + $0x70] sm:$0xf]  ;;  %v1417_v3 = vunpack.c.l.b16 %v1327_v53  ;;  %v1882_v41 = vshll.u32 %v2668_v24, 16  ;;  %v1893_v45 = vor.u32 %v1892_v26, %v1889_v25  ;;  %v1390_v21 = vrot.slane %v1388_v8, 5 }
  0xb2   : > { %v2620_v49 = vor.u32 %v2802_v39, %v2619_v38  ;;  %v1857_v59 = vsel %vm3102_vm2, %v1852_v46, %v1856_v47  ;;  %v1865_v39 = vor.u32 %v1864_v20, %v1861_v19  ;;  %v1896_v46 = vshll.u32 %v2670_v30, 16 }
  0xb3   : > { %v1934_v13 = vunpack.c.l.b16 %v1857_v59  ;;  %v1424_v27 = vpack.c.b16 %v1418_v4, %v1417_v3  ;;  %v1350_v47 = vrot.slane %v1349_v29, 4  ;;  %v1364_v51 = vrot.slane %v1363_v34, 4 }
  0xb4   : > { %v1866_v55 = vrot.slane %v1865_v39, 4  ;;  %v1880_v56 = vrot.slane %v1879_v40, 4  ;;  %v1884_v57 = vrot.slane %v1882_v41, 5  ;;  %v1894_v58 = vrot.slane %v1893_v45, 4 }
  0xb5   : > { %v1940_v38 = vpack.c.b16 %v1934_v13, %v1933_v12  ;;  %v1898_v59 = vrot.slane %v1896_v46, 5  ;;  %v1355_v0 = vsel %vm3102_vm2, %v1350_v47, %v1354_v50  ;;  %v1371_v4 = vshrl.u32 %v2461_v60, 16 }
  0xb6   : > { %v1885_v3 = vsel %vm3102_vm2, %v1880_v56, %v1884_v57  ;;  %v1419_v11 = vunpack.c.l.b16 %v1355_v0  ;;  %v1376_v19 = vrot.slane %v1374_v6, 5  ;;  %v1387_v20 = vrot.slane %v1385_v7, 4 }
  0xb7   : > { %v1899_v5 = vsel %vm3102_vm2, %v1894_v58, %v1898_v59  ;;  %v1936_v14 = vunpack.c.l.b16 %v1885_v3  ;;  %v1373_v16 = vrot.slane %v1371_v4, 4  ;;  %v1394_v31 = vshll.u32 %v2464_v22, 16 }
  0xb8   : > { %v1391_v30 = vor.u32 %v1390_v21, %v1387_v20 }
  0xb9   : > { %v1377_v29 = vor.u32 %v1376_v19, %v1373_v16 }
  0xba   : > { %v1392_v34 = vrot.slane %v1391_v30, 4 }
  0xbb   : > { %v1378_v32 = vrot.slane %v1377_v29, 4 }
  0xbe   : > { %1487 = vmatmul.bf16.vlgmr.msra.gmra.mxu1 %v1423_v35  ;;  %2003 = vmatmul.bf16.vlgmr.msra.gmra.mxu0 %v1939_v36  ;;  %v1366_v35 = vshll.u32 %v2460_v15, 16  ;;  %v1868_v36 = vshll.u32 %v2666_v18, 16  ;;  %v1937_v15 = vunpack.c.l.b16 %v1899_v5  ;;  %v2462_v18 = vld [vmem:[%s3071_s25 + $0xc4] sm:$0x1] }
  0xbf   : > { %v1380_v25 = vshll.u32 %v2462_v18, 16 }
  0xc0   : > { %1767 = vmatmul.bf16.gmra.mxu3 %v2620_v49  ;;  %v1368_v52 = vrot.slane %v1366_v35, 5  ;;  %v1870_v53 = vrot.slane %v1868_v36, 5  ;;  %v1396_v35 = vrot.slane %v1394_v31, 5 }
  0xc1   : > { %1632 = vmatmul.bf16.gmra.mxu2 %v2548_v37  ;;  %v2672_v37 = vld [vmem:[%s3071_s25 + $0x44] sm:$0x1]  ;;  %v1382_v33 = vrot.slane %v1380_v25, 5 }
  0xc2   : > { %v1910_v49 = vshll.u32 %v2672_v37, 16  ;;  %v1369_v1 = vsel %vm3102_vm2, %v1364_v51, %v1368_v52  ;;  %v1871_v2 = vsel %vm3102_vm2, %v1866_v55, %v1870_v53  ;;  %v1397_v40 = vsel %vm3102_vm2, %v1392_v34, %v1396_v35 }
  0xc3   : > { %v1420_v12 = vunpack.c.l.b16 %v1369_v1  ;;  %v1935_v13 = vunpack.c.l.b16 %v1871_v2  ;;  %v1383_v39 = vsel %vm3102_vm2, %v1378_v32, %v1382_v33  ;;  %v1422_v43 = vunpack.c.l.b16 %v1397_v40 }
  0xc4   : > { %v1912_v62 = vrot.slane %v1910_v49, 5 }
  0xc5   : > { %v1425_v23 = vpack.c.b16 %v1420_v12, %v1419_v11  ;;  %v1941_v24 = vpack.c.b16 %v1936_v14, %v1935_v13 }
  0xc6   : > { %v1913_v9 = vsel %vm3102_vm2, %v1908_v61, %v1912_v62 }
  0xc7   : > { %v1938_v17 = vunpack.c.l.b16 %v1913_v9 }
  0xc9   : > { %v1942_v28 = vpack.c.b16 %v1938_v17, %v1937_v15 }
  0xce   : > { %1492 = vmatmul.bf16.gmra.mxu1 %v1424_v27  ;;  %2008 = vmatmul.bf16.gmra.mxu0 %v1940_v38 }
  0xd0   : > { %1772 = vmatmul.bf16.gmra.mxu3 %v2624_v54 }
  0xd1   : > { %1637 = vmatmul.bf16.gmra.mxu2 %v2552_v42  ;;  %v1421_v42 = vunpack.c.l.b16 %v1383_v39 }
  0xd3   : > { %v1426_v44 = vpack.c.b16 %v1422_v43, %v1421_v42 }
  0xdb   : > { %v640_v26 = vpop.f32.mrf.mxu1  ;;  %v630_v27 = vpop.f32.mrf.mxu0 }
  0xde   : > { %1497 = vmatmul.bf16.gmra.mxu1 %v1425_v23  ;;  %2013 = vmatmul.bf16.gmra.mxu0 %v1941_v24 }
  0xe1   : > { %2018 = vmatmul.bf16.vlgmr.msra.gmra.mxu2 %v1942_v28 }
  0xe3   : > { %v642_v37 = vpop.f32.mrf.mxu1  ;;  %v632_v38 = vpop.f32.mrf.mxu0 }
  0xe4   : > { %v972_v36 = vpop.f32.mrf.mxu2  ;;  %v1107_v41 = vpop.f32.mrf.mxu3 }
  0xeb   : > { %v645_v46 = vpop.f32.mrf.mxu1  ;;  %v635_v47 = vpop.f32.mrf.mxu0 }
  0xec   : > { %v974_v45 = vpop.f32.mrf.mxu2  ;;  %v3410_v48 = vpop.f32.mrf.mxu3 }
  0xee   : > { %1502 = vmatmul.bf16.gmra.mxu1 %v1426_v44 }
  0xf3   : > { %v647_v50 = vpop.f32.mrf.mxu1  ;;  %v637_v51 = vpop.f32.mrf.mxu0 }
  0xf4   : > { %v977_v49 = vpop.f32.mrf.mxu2  ;;  %v1112_v52 = vpop.f32.mrf.mxu3 }
  0xfb   : > { %v731_v54 = vpop.f32.mrf.mxu1  ;;  %v1242_v55 = vpop.f32.mrf.mxu0 }
  0xfc   : > { %v979_v53 = vpop.f32.mrf.mxu2  ;;  %v732_v56 = vadd.f32 %v731_v54, %v630_v27  ;;  %v3412_v57 = vpop.f32.mrf.mxu3 }
  0xfe   : > { %v992_v10 = vadd.f32 %v972_v36, %v732_v56 }
 0x100   : > { %v1127_v58 = vadd.f32 %v1107_v41, %v992_v10 }
 0x102   : > { %v1262_v59 = vadd.f32 %v1242_v55, %v1127_v58  ;;  %v3438_v58 = vld [vmem:[%s3481_s2] ss:$0 sm:$0xff] }
 0x103   : > { %v733_v61 = vpop.f32.mrf.mxu1  ;;  %v1244_v62 = vpop.f32.mrf.mxu0 }
 0x104   : > { %v982_v60 = vpop.f32.mrf.mxu2  ;;  %v734_v63 = vadd.f32 %v733_v61, %v632_v38  ;;  %v1117_v1 = vpop.f32.mrf.mxu3 }
 0x106   : > { %v993_v0 = vadd.f32 %v974_v45, %v734_v63 }
 0x10b   : > { %v736_v3 = vpop.f32.mrf.mxu1  ;;  %v1247_v4 = vpop.f32.mrf.mxu0 }
 0x10c   : > { %v984_v2 = vpop.f32.mrf.mxu2  ;;  %v737_v5 = vadd.f32 %v736_v3, %v635_v47  ;;  %v3414_v11 = vpop.f32.mrf.mxu3 }
 0x10e   : > { %v994_v6 = vadd.f32 %v977_v49, %v737_v5 }
 0x110   : > { %v1129_v7 = vadd.f32 %v1112_v52, %v994_v6 }
 0x112   : > { %v1264_v8 = vadd.f32 %v1247_v4, %v1129_v7 }
 0x113   : > { %v738_v12 = vpop.f32.mrf.mxu1  ;;  %v3416_v13 = vpop.f32.mrf.mxu0 }
 0x114   : > { %v987_v9 = vpop.f32.mrf.mxu2  ;;  %v739_v14 = vadd.f32 %v738_v12, %v637_v51  ;;  %v1122_v20 = vpop.f32.mrf.mxu3 }
 0x116   : > { %v995_v15 = vadd.f32 %v979_v53, %v739_v14 }
 0x118   : > { %v1130_v3 = vadd.f32 %v3412_v57, %v995_v15 }
 0x11a   : > { %v1265_v14 = vadd.f32 %v3416_v13, %v1130_v3 }
 0x11b   : > { %v741_v17 = vpop.f32.mrf.mxu1  ;;  %v1252_v18 = vpop.f32.mrf.mxu0 }
 0x11c   : > { %v989_v16 = vpop.f32.mrf.mxu2  ;;  %v742_v19 = vadd.f32 %v741_v17, %v640_v26  ;;  %v3424_v30 = vpop.f32.mrf.mxu3 }
 0x11e   : > { %v996_v21 = vadd.f32 %v982_v60, %v742_v19 }
 0x120   : > { %v1131_v22 = vadd.f32 %v1117_v1, %v996_v21 }
 0x122   : > { %v3418_v23 = vadd.f32 %v1252_v18, %v1131_v22 }
 0x123   : > { %v743_v25 = vpop.f32.mrf.mxu1  ;;  %v3420_v27 = vpop.f32.mrf.mxu0 }
 0x124   : > { %v1623_v24 = vpop.f32.mrf.mxu2  ;;  %v744_v28 = vadd.f32 %v743_v25, %v642_v37  ;;  %v1758_v36 = vpop.f32.mrf.mxu3 }
 0x126   : > { %v3422_v29 = vadd.f32 %v984_v2, %v744_v28 }
 0x12b   : > { %v746_v32 = vpop.f32.mrf.mxu1  ;;  %v1257_v33 = vpop.f32.mrf.mxu0 }
 0x12c   : > { %v1625_v31 = vpop.f32.mrf.mxu2  ;;  %v747_v34 = vadd.f32 %v746_v32, %v645_v46  ;;  %v1760_v43 = vpop.f32.mrf.mxu3  ;;  %v1128_v46 = vadd.f32 %v3410_v48, %v993_v0  ;;  %v1132_v32 = vadd.f32 %v3414_v11, %v3422_v29 }
 0x12e   : > { %v998_v35 = vadd.f32 %v987_v9, %v747_v34  ;;  %v1263_v52 = vadd.f32 %v1244_v62, %v1128_v46 }
 0x130   : > { %v1133_v26 = vadd.f32 %v1122_v20, %v998_v35 }
 0x132   : > { %v3426_v38 = vadd.f32 %v1257_v33, %v1133_v26 }
 0x133   : > { %v748_v40 = vpop.f32.mrf.mxu1  ;;  %v3428_v41 = vpop.f32.mrf.mxu0 }
 0x134   : > { %v1628_v39 = vpop.f32.mrf.mxu2  ;;  %v749_v42 = vadd.f32 %v748_v40, %v647_v50  ;;  %v1763_v10 = vpop.f32.mrf.mxu3 }
 0x136   : > { %v3430_v37 = vadd.f32 %v989_v16, %v749_v42 }
 0x13b   : > { %v1488_v44 = vpop.f32.mrf.mxu1  ;;  %v2004_v45 = vpop.f32.mrf.mxu0 }
 0x13c   : > { %v1508_v47 = vadd.f32 %v1488_v44, %v1262_v59  ;;  %v1630_v49 = vpop.f32.mrf.mxu2  ;;  %v1765_v7 = vpop.f32.mrf.mxu3 }
 0x13e   : > { %v1643_v51 = vadd.f32 %v1623_v24, %v1508_v47 }
 0x140   : > { %v1778_v53 = vadd.f32 %v1758_v36, %v1643_v51  ;;  %v1267_v36 = vadd.f32 %v3420_v27, %v1132_v32 }
 0x142   : > { %v2024_v50 = vadd.f32 %v2004_v45, %v1778_v53  ;;  %v1134_v53 = vadd.f32 %v3424_v30, %v3430_v37 }
 0x143   : > { %v1490_v54 = vpop.f32.mrf.mxu1  ;;  %v2006_v55 = vpop.f32.mrf.mxu0 }
 0x144   : > { %v1509_v56 = vadd.f32 %v1490_v54, %v1263_v52  ;;  %v1633_v59 = vpop.f32.mrf.mxu2  ;;  %v2036_v61 = vadd.f32 %v3438_v58, %v2024_v50  ;;  %v1768_v20 = vpop.f32.mrf.mxu3 }
 0x146   : > { %v1644_v60 = vadd.f32 %v1625_v31, %v1509_v56  ;;  %v2044_v4 = vmax.f32 %v2036_v61, 0.0 }
 0x148   : > { %v1779_v48 = vadd.f32 %v1760_v43, %v1644_v60  ;;  %v1269_v60 = vadd.f32 %v3428_v41, %v1134_v53 }
 0x14a   : > { %v2025_v62 = vadd.f32 %v2006_v55, %v1779_v48 }
 0x14b   : > { %v1493_v63 = vpop.f32.mrf.mxu1  ;;  %v2009_v0 = vpop.f32.mrf.mxu0 }
 0x14c   : > { %v2037_v1 = vadd.f32 %v3438_v58, %v2025_v62  ;;  %v1510_v2 = vadd.f32 %v1493_v63, %v1264_v8  ;;  %v1635_v12 = vpop.f32.mrf.mxu2  ;;  %v1770_v40 = vpop.f32.mrf.mxu3 }
 0x14e   : > { %v2045_v5 = vmax.f32 %v2037_v1, 0.0  ;;  %v1645_v6 = vadd.f32 %v1628_v39, %v1510_v2 }
 0x150   : > { %v2823_v9 = vpack.c.bf16 %v2045_v5, %v2044_v4  ;;  %v1780_v16 = vadd.f32 %v1763_v10, %v1645_v6 }
 0x152   : > { %2824 = vst [vmem:[%s3448_s14] sm:$0xff] %v2823_v9   ;;  %v2026_v57 = vadd.f32 %v2009_v0, %v1780_v16 }
 0x153   : > { %v1495_v17 = vpop.f32.mrf.mxu1  ;;  %v2011_v8 = vpop.f32.mrf.mxu0 }
 0x154   : > { %v1511_v18 = vadd.f32 %v1495_v17, %v1265_v14  ;;  %v2038_v21 = vadd.f32 %v3438_v58, %v2026_v57  ;;  %v1638_v24 = vpop.f32.mrf.mxu2  ;;  %v1773_v27 = vpop.f32.mrf.mxu3 }
 0x156   : > { %v1646_v15 = vadd.f32 %v1630_v49, %v1511_v18  ;;  %v2046_v33 = vmax.f32 %v2038_v21, 0.0 }
 0x158   : > { %v1781_v19 = vadd.f32 %v1765_v7, %v1646_v15 }
 0x15a   : > { %v2027_v22 = vadd.f32 %v2011_v8, %v1781_v19 }
 0x15b   : > { %v1498_v25 = vpop.f32.mrf.mxu1  ;;  %v2014_v13 = vpop.f32.mrf.mxu0 }
 0x15c   : > { %v2039_v28 = vadd.f32 %v3438_v58, %v2027_v22  ;;  %v1512_v31 = vadd.f32 %v1498_v25, %v3418_v23  ;;  %v1640_v44 = vpop.f32.mrf.mxu2  ;;  %v1775_v0 = vpop.f32.mrf.mxu3 }
 0x15e   : > { %v2047_v34 = vmax.f32 %v2039_v28, 0.0  ;;  %v1647_v35 = vadd.f32 %v1633_v59, %v1512_v31 }
 0x160   : > { %v2828_v26 = vpack.c.bf16 %v2047_v34, %v2046_v33  ;;  %v1782_v39 = vadd.f32 %v1768_v20, %v1647_v35 }
 0x162   : > { %2840 = vst [vmem:[%s3448_s14 + $0x8] sm:$0xff] %v2828_v26   ;;  %v2028_v45 = vadd.f32 %v2014_v13, %v1782_v39 }
 0x163   : > { %v1500_v42 = vpop.f32.mrf.mxu1  ;;  %v2016_v23 = vpop.f32.mrf.mxu0 }
 0x164   : > { %v1513_v43 = vadd.f32 %v1500_v42, %v1267_v36  ;;  %v2040_v46 = vadd.f32 %v3438_v58, %v2028_v45  ;;  %v2019_v10 = vpop.f32.mrf.mxu2 }
 0x166   : > { %v1648_v47 = vadd.f32 %v1635_v12, %v1513_v43  ;;  %v2048_v54 = vmax.f32 %v2040_v46, 0.0 }
 0x168   : > { %v1783_v49 = vadd.f32 %v1770_v40, %v1648_v47 }
 0x16a   : > { %v2029_v11 = vadd.f32 %v2016_v23, %v1783_v49 }
 0x16b   : > { %v1503_v29 = vpop.f32.mrf.mxu1 }
 0x16c   : > { %v2041_v51 = vadd.f32 %v3438_v58, %v2029_v11  ;;  %v1514_v52 = vadd.f32 %v1503_v29, %v3426_v38  ;;  %v2021_v1 = vpop.f32.mrf.mxu2 }
 0x16e   : > { %v2049_v55 = vmax.f32 %v2041_v51, 0.0  ;;  %v1649_v56 = vadd.f32 %v1638_v24, %v1514_v52 }
 0x170   : > { %v2833_v50 = vpack.c.bf16 %v2049_v55, %v2048_v54  ;;  %v1784_v59 = vadd.f32 %v1773_v27, %v1649_v56 }
 0x172   : > { %2841 = vst [vmem:[%s3448_s14 + $0x10] sm:$0xff] %v2833_v50   ;;  %v2030_v62 = vadd.f32 %v2019_v10, %v1784_v59 }
 0x173   : > { %v1505_v48 = vpop.f32.mrf.mxu1 }
 0x174   : > { %v1515_v61 = vadd.f32 %v1505_v48, %v1269_v60  ;;  %v2042_v2 = vadd.f32 %v3438_v58, %v2030_v62 }
 0x176   : > { %v1650_v63 = vadd.f32 %v1640_v44, %v1515_v61  ;;  %v2050_v3 = vmax.f32 %v2042_v2, 0.0 }
 0x178   : > { %v1785_v38 = vadd.f32 %v1775_v0, %v1650_v63 }
 0x17a   : > { %v2031_v30 = vadd.f32 %v2021_v1, %v1785_v38 }
 0x17c   : > { %v2043_v37 = vadd.f32 %v3438_v58, %v2031_v30 }
 0x17e   : > { %v2051_v4 = vmax.f32 %v2043_v37, 0.0 }
 0x180   : > { %v2838_v5 = vpack.c.bf16 %v2051_v4, %v2050_v3 }
 0x182   : > { %2842 = vst [vmem:[%s3448_s14 + $0x18] sm:$0xff] %v2838_v5  }
 0x183 PF: > { %p10_p9 = scmp.ge.s32.totalorder %s2948_s16, 4   ;;  %s3485_s12 = smov %s2905_s13 }
 0x184   : > { %s3486_s13 = smov %s2957_s19  ;;  %s3487_s14 = smov %s2948_s16 }
 0x185   :  { %12 = sbr.rel (!%p10_p9) target bundleno = 2 (0x2), region = 121 }

// kernel: bottleneck_pallas.5
= control target key start
LH: loop header
LB: loop body
LE: loop exit
PB: predicated region body
PF: predicated region fallthrough
CT: control target
= control target key end

     0   :  { %s837_s21 = smov 0   ;;  %s925_s0 = inlined_call_operand.vmem [shape: bf16[128,128], index: 0, kind: input, shape index: {}]   ;;  %s926_s1 = inlined_call_operand.vmem [shape: bf16[128,128], index: 1, kind: input, shape index: {}]   ;;  %s927_s2 = inlined_call_operand.vmem [shape: f32[1,128], index: 2, kind: input, shape index: {}]   ;;  %s928_s3 = inlined_call_operand.vmem [shape: bf16[128,128], index: 3, kind: input, shape index: {}]   ;;  %s929_s4 = inlined_call_operand.vmem [shape: bf16[128,128], index: 4, kind: input, shape index: {}]   ;;  %s930_s5 = inlined_call_operand.vmem [shape: f32[1,128], index: 5, kind: input, shape index: {}]   ;;  %s931_s6 = inlined_call_operand.vmem [shape: f32[128,128], index: 6, kind: output, shape index: {}]  }
   0x1 LB: > { %s635_s22 = sadd.s32 4294967295, %s800_s21   ;;  %p639_p0 = scmp.ge.s32.totalorder %s800_s21, 1  ;;  %s800_s21 = sphi %s837_s21, %s16_s21  }
   0x2   : > { %p224_p1 = scmp.lt.s32.totalorder %s800_s21, 3 }
   0x4   : > { %p225_p2 = pnand %p639_p0, %p224_p1 }
   0x5   : > { %s640_s15 = sshll.u32 (!%p225_p2), %s635_s22, 3 }
   0x6   : > { %228 = sbr.rel (%p225_p2) target bundleno = 209 (0xd1), region = 44  ;;  %p260_p3 = scmp.lt.s32.totalorder (!%p225_p2), %s640_s15, 15 }
   0xb   : > { %v767_v0 = vld [vmem:[%s929_s4 + $0x38] sm:$0xff]  ;;  %v766_v2 = vld [vmem:[%s929_s4 + $0x30] sm:$0xff]  ;;  %v765_v4 = vld [vmem:[%s929_s4 + $0x28] sm:$0xff]  ;;  %s933_s15 = smov (!%p260_p3, %s640_s15), 15 }
   0xc   : > { %v755_v1 = vld [vmem:[%s926_s1 + $0x38] sm:$0xff]  ;;  %397 = vmatpush.bf16.msra.mxu0 %v767_v0  ;;  %768 = vmatpush.bf16.msra.mxu2 %v767_v0  ;;  %v754_v3 = vld [vmem:[%s926_s1 + $0x30] sm:$0xff]  ;;  %v753_v5 = vld [vmem:[%s926_s1 + $0x28] sm:$0xff]  ;;  %s641_s29 = sshll.u32 %s933_s15, 2  ;;  %s645_s23 = sshll.u32 %s933_s15, 3 }
   0xd   : > { %498 = vmatpush.bf16.msra.mxu1 %v755_v1  ;;  %776 = vmatpush.bf16.msra.mxu3 %v755_v1  ;;  %v764_v6 = vld [vmem:[%s929_s4 + $0x20] sm:$0xff]  ;;  %v763_v8 = vld [vmem:[%s929_s4 + $0x18] sm:$0xff]  ;;  %v762_v10 = vld [vmem:[%s929_s4 + $0x10] sm:$0xff]  ;;  %s269_s10 = scalar_lea.vmem %s928_s3, %s641_s29  ;;  %s263_s16 = scalar_lea.vmem %s925_s0, %s641_s29 }
   0xe   : > { %v752_v7 = vld [vmem:[%s926_s1 + $0x20] sm:$0xff]  ;;  %v751_v9 = vld [vmem:[%s926_s1 + $0x18] sm:$0xff]  ;;  %v750_v11 = vld [vmem:[%s926_s1 + $0x10] sm:$0xff]  ;;  %s912_s25 = scalar_lea.vmem %s931_s6, %s645_s23 }
   0xf   : > { %v761_v12 = vld [vmem:[%s929_s4 + $0x8] sm:$0xff]  ;;  %v760_v14 = vld [vmem:[%s929_s4] sm:$0xff]  ;;  %v758_v17 = vld [vmem:[%s269_s10 + $0x10] sm:$0xff] }
  0x10   : > { %398 = vmatpush.bf16.msra.mxu0 %v766_v2  ;;  %769 = vmatpush.bf16.msra.mxu2 %v766_v2  ;;  %v749_v13 = vld [vmem:[%s926_s1 + $0x8] sm:$0xff]  ;;  %v748_v15 = vld [vmem:[%s926_s1] sm:$0xff]  ;;  %v746_v19 = vld [vmem:[%s263_s16 + $0x10] sm:$0xff] }
  0x11   : > { %499 = vmatpush.bf16.msra.mxu1 %v754_v3  ;;  %777 = vmatpush.bf16.msra.mxu3 %v754_v3  ;;  %v756_v16 = vld [vmem:[%s269_s10] sm:$0xff]  ;;  %v757_v20 = vld [vmem:[%s269_s10 + $0x8] sm:$0xff]  ;;  %v759_v21 = vld [vmem:[%s269_s10 + $0x18] sm:$0xff] }
  0x12   : > { %v744_v18 = vld [vmem:[%s263_s16] sm:$0xff]  ;;  %v745_v22 = vld [vmem:[%s263_s16 + $0x8] sm:$0xff]  ;;  %v747_v23 = vld [vmem:[%s263_s16 + $0x18] sm:$0xff] }
  0x13   : > { %v792_v25 = vld [vmem:[%s927_s2] ss:$0 sm:$0xff] }
  0x14   : > { %399 = vmatpush.bf16.msra.mxu0 %v765_v4  ;;  %770 = vmatpush.bf16.msra.mxu2 %v765_v4  ;;  %v793_v28 = vld [vmem:[%s930_s5] ss:$0 sm:$0xff] }
  0x15   : > { %500 = vmatpush.bf16.msra.mxu1 %v753_v5  ;;  %778 = vmatpush.bf16.msra.mxu3 %v753_v5 }
  0x18   : > { %400 = vmatpush.bf16.msra.mxu0 %v764_v6  ;;  %771 = vmatpush.bf16.msra.mxu2 %v764_v6 }
  0x19   : > { %501 = vmatpush.bf16.msra.mxu1 %v752_v7  ;;  %779 = vmatpush.bf16.msra.mxu3 %v752_v7 }
  0x1c   : > { %401 = vmatpush.bf16.msra.mxu0 %v763_v8  ;;  %772 = vmatpush.bf16.msra.mxu2 %v763_v8 }
  0x1d   : > { %502 = vmatpush.bf16.msra.mxu1 %v751_v9  ;;  %780 = vmatpush.bf16.msra.mxu3 %v751_v9 }
  0x20   : > { %402 = vmatpush.bf16.msra.mxu0 %v762_v10  ;;  %773 = vmatpush.bf16.msra.mxu2 %v762_v10 }
  0x21   : > { %503 = vmatpush.bf16.msra.mxu1 %v750_v11  ;;  %781 = vmatpush.bf16.msra.mxu3 %v750_v11 }
  0x24   : > { %403 = vmatpush.bf16.msra.mxu0 %v761_v12  ;;  %774 = vmatpush.bf16.msra.mxu2 %v761_v12 }
  0x25   : > { %504 = vmatpush.bf16.msra.mxu1 %v749_v13  ;;  %782 = vmatpush.bf16.msra.mxu3 %v749_v13 }
  0x28   : > { %404 = vmatpush.bf16.msra.mxu0 %v760_v14  ;;  %775 = vmatpush.bf16.msra.mxu2 %v760_v14 }
  0x29   : > { %505 = vmatpush.bf16.msra.mxu1 %v748_v15  ;;  %783 = vmatpush.bf16.msra.mxu3 %v748_v15 }
  0x2b   : > { %405 = vmatmul.bf16.vlgmr.msra.gmra.mxu0 %v756_v16  ;;  %415 = vmatmul.bf16.vlgmr.msra.gmra.mxu2 %v758_v17 }
  0x2c   : > { %506 = vmatmul.bf16.vlgmr.msra.gmra.mxu1 %v744_v18  ;;  %516 = vmatmul.bf16.vlgmr.msra.gmra.mxu3 %v746_v19 }
  0x3b   : > { %410 = vmatmul.bf16.gmra.mxu0 %v757_v20  ;;  %420 = vmatmul.bf16.gmra.mxu2 %v759_v21 }
  0x3c   : > { %511 = vmatmul.bf16.gmra.mxu1 %v745_v22  ;;  %521 = vmatmul.bf16.gmra.mxu3 %v747_v23 }
  0xa8   : > { %v406_v24 = vpop.f32.mrf.mxu0 }
  0xa9   : > { %v507_v26 = vpop.f32.mrf.mxu1 }
  0xaa   : > { %v508_v27 = vadd.f32 %v507_v26, %v406_v24 }
  0xac   : > { %v531_v29 = vadd.f32 %v792_v25, %v508_v27 }
  0xae   : > { %v543_v30 = vadd.f32 %v793_v28, %v531_v29  ;;  %v416_v31 = vpop.f32.mrf.mxu2 }
  0xaf   : > { %v517_v32 = vpop.f32.mrf.mxu3 }
  0xb0   : > { %v551_v33 = vmax.f32 %v543_v30, 0.0  ;;  %v518_v34 = vadd.f32 %v517_v32, %v416_v31  ;;  %v408_v35 = vpop.f32.mrf.mxu0 }
  0xb1   : > { %v509_v36 = vpop.f32.mrf.mxu1 }
  0xb2   : > { %559 = vst [vmem:[%s912_s25] sm:$0xff] %v551_v33  ;;  %v535_v37 = vadd.f32 %v792_v25, %v518_v34  ;;  %v510_v38 = vadd.f32 %v509_v36, %v408_v35 }
  0xb4   : > { %v547_v39 = vadd.f32 %v793_v28, %v535_v37  ;;  %v532_v40 = vadd.f32 %v792_v25, %v510_v38 }
  0xb6   : > { %v555_v41 = vmax.f32 %v547_v39, 0.0  ;;  %v544_v42 = vadd.f32 %v793_v28, %v532_v40  ;;  %v418_v43 = vpop.f32.mrf.mxu2 }
  0xb7   : > { %v519_v44 = vpop.f32.mrf.mxu3 }
  0xb8   : > { %563 = vst [vmem:[%s912_s25 + $0x20] sm:$0xff] %v555_v41  ;;  %v552_v45 = vmax.f32 %v544_v42, 0.0  ;;  %v520_v46 = vadd.f32 %v519_v44, %v418_v43  ;;  %v411_v47 = vpop.f32.mrf.mxu0 }
  0xb9   : > { %v512_v48 = vpop.f32.mrf.mxu1 }
  0xba   : > { %560 = vst [vmem:[%s912_s25 + $0x8] sm:$0xff] %v552_v45  ;;  %v536_v49 = vadd.f32 %v792_v25, %v520_v46  ;;  %v513_v50 = vadd.f32 %v512_v48, %v411_v47 }
  0xbc   : > { %v548_v51 = vadd.f32 %v793_v28, %v536_v49  ;;  %v533_v52 = vadd.f32 %v792_v25, %v513_v50 }
  0xbe   : > { %v556_v53 = vmax.f32 %v548_v51, 0.0  ;;  %v545_v54 = vadd.f32 %v793_v28, %v533_v52  ;;  %v421_v55 = vpop.f32.mrf.mxu2 }
  0xbf   : > { %v522_v56 = vpop.f32.mrf.mxu3 }
  0xc0   : > { %564 = vst [vmem:[%s912_s25 + $0x28] sm:$0xff] %v556_v53  ;;  %v553_v57 = vmax.f32 %v545_v54, 0.0  ;;  %v523_v58 = vadd.f32 %v522_v56, %v421_v55  ;;  %v413_v59 = vpop.f32.mrf.mxu0 }
  0xc1   : > { %v514_v60 = vpop.f32.mrf.mxu1 }
  0xc2   : > { %561 = vst [vmem:[%s912_s25 + $0x10] sm:$0xff] %v553_v57  ;;  %v537_v61 = vadd.f32 %v792_v25, %v523_v58  ;;  %v515_v62 = vadd.f32 %v514_v60, %v413_v59 }
  0xc4   : > { %v549_v63 = vadd.f32 %v793_v28, %v537_v61  ;;  %v534_v0 = vadd.f32 %v792_v25, %v515_v62 }
  0xc6   : > { %v557_v1 = vmax.f32 %v549_v63, 0.0  ;;  %v546_v2 = vadd.f32 %v793_v28, %v534_v0  ;;  %v423_v3 = vpop.f32.mrf.mxu2 }
  0xc7   : > { %v524_v4 = vpop.f32.mrf.mxu3 }
  0xc8   : > { %565 = vst [vmem:[%s912_s25 + $0x30] sm:$0xff] %v557_v1  ;;  %v554_v5 = vmax.f32 %v546_v2, 0.0  ;;  %v525_v6 = vadd.f32 %v524_v4, %v423_v3 }
  0xca   : > { %562 = vst [vmem:[%s912_s25 + $0x18] sm:$0xff] %v554_v5  ;;  %v538_v7 = vadd.f32 %v792_v25, %v525_v6 }
  0xcc   : > { %v550_v8 = vadd.f32 %v793_v28, %v538_v7 }
  0xce   : > { %v558_v9 = vmax.f32 %v550_v8, 0.0 }
  0xd0   : > { %566 = vst [vmem:[%s912_s25 + $0x38] sm:$0xff] %v558_v9 }
  0xd1 PF: > { %s16_s21 = sadd.s32 1, %s800_s21  }
  0xd2   : > { %p13_p4 = scmp.ge.s32.totalorder %s16_s21, 4  }
  0xd4   :  { %15 = sbr.rel (!%p13_p4) target bundleno = 1 (0x1), region = 77 }

</bundles_post_ra>
